<compile_context>
chip_gen: v7x
topology: tpu7x:2x2x1
jax: 0.10.0
libtpu: 0.0.40
codegen_flags: <defaults>
</compile_context>

<pallas_src>
import jax
import jax.numpy as jnp
from jax.experimental import pallas as pl
from jax.experimental.pallas import tpu as pltpu

# ----------------------------- configuration ---------------------------------
PATCH = 8            # patch size of the synthetic "CLIP" patch-embed stem
EMBED_DIM = 64       # internal width of the synthetic encoder
CLIP_FEAT = 1024     # RN50 CLIP image-feature dim (fc1 input, as in the module)
HIDDEN = 512         # fc1 output dim (RN50 branch of VisionClip)
VISUAL_FEATURES = 64 # fc2 output dim (the `visual_features` ctor arg)
OUT_PAD = 128        # lane-dense padded output width (sliced back to 64)
K = PATCH * PATCH * 3  # flattened patch length = 192
TB = 128             # batch tile (rows per grid step)


def _round_up(x, m):
    return ((x + m - 1) // m) * m


# ------------------------------- kernel --------------------------------------
def vision_clip_kernel(pooled_ref, w_emb_ref, b_emb_ref, w_proj_ref, b_proj_ref,
                       w_fc1_ref, b_fc1_ref, w_fc2_ref, b_fc2_ref, out_ref):
    # pooled_ref: [TB, K] f32.  Mean over patches was hoisted into the wrapper,
    # which is algebraically exact because the patch embed is linear (+ bias).
    x = pooled_ref[...]

    # --- synthetic CLIP image encoder: (pooled) patch-embed -> projection ---
    # TODO(synk): the pretrained CLIP RN50 backbone (ResNet stages + attention
    # pooling) of clip_model.encode_image is not reproduced; this deterministic
    # stand-in only matches the [B, 1024] image-feature interface fc1 consumes.
    emb = jnp.dot(x.astype(jnp.bfloat16), w_emb_ref[...],
                  preferred_element_type=jnp.float32) + b_emb_ref[...]       # [TB, D]
    feat = jnp.dot(emb.astype(jnp.bfloat16), w_proj_ref[...],
                   preferred_element_type=jnp.float32) + b_proj_ref[...]     # [TB, 1024]

    # --- VisionClip head: output = fc2(relu(fc1(feat))) (exact semantics) ---
    h = jnp.dot(feat.astype(jnp.bfloat16), w_fc1_ref[...],
                preferred_element_type=jnp.float32) + b_fc1_ref[...]         # [TB, 512]
    h = jnp.maximum(h, 0.0)                                                  # ReLU (f32)
    out = jnp.dot(h.astype(jnp.bfloat16), w_fc2_ref[...],
                  preferred_element_type=jnp.float32) + b_fc2_ref[...]       # [TB, 128]
    out_ref[...] = out.astype(out_ref.dtype)


# ------------------------------- params --------------------------------------
def make_params(key):
    ks = jax.random.split(key, 8)

    def lin(k, fan_in, fan_out):
        # deterministic init, stored as [in, out] (== PyTorch weight [out, in].T)
        return (jax.random.normal(k, (fan_in, fan_out), jnp.float32)
                / jnp.sqrt(jnp.float32(fan_in)))

    w_emb = lin(ks[0], K, EMBED_DIM)
    w_proj = lin(ks[1], EMBED_DIM, CLIP_FEAT)
    w_fc1 = lin(ks[2], CLIP_FEAT, HIDDEN)
    b_fc1 = 0.01 * jax.random.normal(ks[3], (1, HIDDEN), jnp.float32)
    w_fc2 = lin(ks[4], HIDDEN, VISUAL_FEATURES)
    b_fc2 = 0.01 * jax.random.normal(ks[5], (1, VISUAL_FEATURES), jnp.float32)

    # zero-pad fc2 to a lane-dense 128-wide output; wrapper slices back to 64.
    w_fc2 = jnp.pad(w_fc2, ((0, 0), (0, OUT_PAD - VISUAL_FEATURES)))
    b_fc2 = jnp.pad(b_fc2, ((0, 0), (0, OUT_PAD - VISUAL_FEATURES)))

    # matmul weights in bf16 (MXU-native; halves weight DMA); biases stay f32.
    return (
        w_emb.astype(jnp.bfloat16),
        jnp.zeros((1, EMBED_DIM), jnp.float32),
        w_proj.astype(jnp.bfloat16),
        jnp.zeros((1, CLIP_FEAT), jnp.float32),
        w_fc1.astype(jnp.bfloat16),
        b_fc1,
        w_fc2.astype(jnp.bfloat16),
        b_fc2,
    )


# ------------------------------- wrapper --------------------------------------
def vision_clip_forward(x_nchw, params):
    B, C, H, W = x_nchw.shape
    P = PATCH
    assert C * P * P == K and H % P == 0 and W % P == 0

    # Pool BEFORE the patch-embed matmul (exact: mean commutes with linear+bias).
    # Done directly on the NCHW view -> only [B, K] crosses into the kernel and
    # the big 6-D transpose of the full image tensor disappears.
    xp = x_nchw.astype(jnp.float32).reshape(B, C, H // P, P, W // P, P)
    pooled = xp.mean(axis=(2, 4))                          # [B, C, P, P]
    pooled = pooled.transpose(0, 2, 3, 1).reshape(B, K)    # [B, K]  ((ph,pw,c) order)

    # Pad batch to a multiple of the batch tile and build a parallel batch grid.
    Bp = max(TB, _round_up(B, TB))
    if Bp != B:
        pooled = jnp.pad(pooled, ((0, Bp - B), (0, 0)))
    grid = (Bp // TB,)

    def resident(arr):  # weight block: whole array, same block every grid step
        return pl.BlockSpec(arr.shape, lambda i: (0, 0))

    (w_emb, b_emb, w_proj, b_proj, w_fc1, b_fc1, w_fc2, b_fc2) = params
    in_specs = [
        pl.BlockSpec((TB, K), lambda i: (i, 0)),           # pooled patches (per-tile)
        resident(w_emb), resident(b_emb),
        resident(w_proj), resident(b_proj),
        resident(w_fc1), resident(b_fc1),
        resident(w_fc2), resident(b_fc2),
    ]
    out_specs = pl.BlockSpec((TB, OUT_PAD), lambda i: (i, 0))

    flops = 2 * Bp * (K * EMBED_DIM + EMBED_DIM * CLIP_FEAT
                      + CLIP_FEAT * HIDDEN + HIDDEN * OUT_PAD)
    bytes_w = sum(int(p.size) * p.dtype.itemsize for p in params)
    bytes_accessed = bytes_w + Bp * K * 4 + Bp * OUT_PAD * 4
    cost = pl.CostEstimate(flops=flops, transcendentals=0,
                           bytes_accessed=bytes_accessed)

    out = pl.pallas_call(
        vision_clip_kernel,
        out_shape=jax.ShapeDtypeStruct((Bp, OUT_PAD), jnp.float32),
        grid=grid,
        in_specs=in_specs,
        out_specs=out_specs,
        compiler_params=pltpu.CompilerParams(
            dimension_semantics=("parallel",)),
        cost_estimate=cost,
    )(pooled, *params)

    return out[:B, :VISUAL_FEATURES]


# ------------------------------- reference ------------------------------------
def vision_clip_reference(x_nchw, params):
    """Pure-JAX reference with the same bf16-operand / f32-accumulate math."""
    B, C, H, W = x_nchw.shape
    P = PATCH
    xp = x_nchw.astype(jnp.float32).reshape(B, C, H // P, P, W // P, P)
    pooled = xp.mean(axis=(2, 4)).transpose(0, 2, 3, 1).reshape(B, K)
    (w_emb, b_emb, w_proj, b_proj, w_fc1, b_fc1, w_fc2, b_fc2) = params
    emb = jnp.dot(pooled.astype(jnp.bfloat16), w_emb,
                  preferred_element_type=jnp.float32) + b_emb
    feat = jnp.dot(emb.astype(jnp.bfloat16), w_proj,
                   preferred_element_type=jnp.float32) + b_proj
    h = jnp.maximum(jnp.dot(feat.astype(jnp.bfloat16), w_fc1,
                            preferred_element_type=jnp.float32) + b_fc1, 0.0)
    out = jnp.dot(h.astype(jnp.bfloat16), w_fc2,
                  preferred_element_type=jnp.float32) + b_fc2
    return out[:, :VISUAL_FEATURES]


# ------------------------------- main ------------------------------------------
if __name__ == "__main__":
    key = jax.random.PRNGKey(0)
    k_x, k_p = jax.random.split(key)

    # Small NCHW CLIP-style image input.
    x = jax.random.normal(k_x, (2, 3, 32, 32), jnp.float32)
    params = make_params(k_p)

    out = vision_clip_forward(x, params)
    jax.block_until_ready(out)

    assert out.shape == (2, VISUAL_FEATURES) and out.dtype == jnp.float32
    assert bool(jnp.all(jnp.isfinite(out)))
    ref = vision_clip_reference(x, params)
    assert bool(jnp.allclose(out, ref, atol=5e-3, rtol=5e-3))
    print("KERNEL_OK")
</pallas_src>

<mosaic_0001>
module attributes {stable_mosaic.version = 11 : i64} {
  func.func @vision_clip_kernel(%arg0: i32, %arg1: memref<128x192xf32, #tpu.memory_space<vmem>>, %arg2: memref<192x64xbf16, #tpu.memory_space<vmem>>, %arg3: memref<1x64xf32, #tpu.memory_space<vmem>>, %arg4: memref<64x1024xbf16, #tpu.memory_space<vmem>>, %arg5: memref<1x1024xf32, #tpu.memory_space<vmem>>, %arg6: memref<1024x512xbf16, #tpu.memory_space<vmem>>, %arg7: memref<1x512xf32, #tpu.memory_space<vmem>>, %arg8: memref<512x128xbf16, #tpu.memory_space<vmem>>, %arg9: memref<1x128xf32, #tpu.memory_space<vmem>>, %arg10: memref<128x128xf32, #tpu.memory_space<vmem>>) attributes {dimension_semantics = [#tpu.dimension_semantics<parallel>], iteration_bounds = array<i64: 1>, scalar_prefetch = 0 : i64, scratch_operands = 0 : i64, tpu.core_type = #tpu.core_type<tc>, window_params = [{transform_indices = @transform_0, window_bounds = array<i64: 128, 192>}, {pipeline_mode = #tpu.pipeline_mode<synchronous>, transform_indices = @transform_1, window_bounds = array<i64: 192, 64>}, {pipeline_mode = #tpu.pipeline_mode<synchronous>, transform_indices = @transform_2, window_bounds = array<i64: 1, 64>}, {pipeline_mode = #tpu.pipeline_mode<synchronous>, transform_indices = @transform_3, window_bounds = array<i64: 64, 1024>}, {pipeline_mode = #tpu.pipeline_mode<synchronous>, transform_indices = @transform_4, window_bounds = array<i64: 1, 1024>}, {pipeline_mode = #tpu.pipeline_mode<synchronous>, transform_indices = @transform_5, window_bounds = array<i64: 1024, 512>}, {pipeline_mode = #tpu.pipeline_mode<synchronous>, transform_indices = @transform_6, window_bounds = array<i64: 1, 512>}, {pipeline_mode = #tpu.pipeline_mode<synchronous>, transform_indices = @transform_7, window_bounds = array<i64: 512, 128>}, {pipeline_mode = #tpu.pipeline_mode<synchronous>, transform_indices = @transform_8, window_bounds = array<i64: 1, 128>}, {transform_indices = @transform_9, window_bounds = array<i64: 128, 128>}]} {
    %c0 = arith.constant 0 : index
    %c0_0 = arith.constant 0 : index
    %0 = vector.load %arg1[%c0, %c0_0] : memref<128x192xf32, #tpu.memory_space<vmem>>, vector<128x192xf32>
    %1 = arith.truncf %0 : vector<128x192xf32> to vector<128x192xbf16>
    %c0_1 = arith.constant 0 : index
    %c0_2 = arith.constant 0 : index
    %2 = vector.load %arg2[%c0_1, %c0_2] : memref<192x64xbf16, #tpu.memory_space<vmem>>, vector<192x64xbf16>
    %cst = arith.constant dense<0.000000e+00> : vector<128x64xf32>
    %3 = tpu.matmul %1, %2, %cst {dimension_numbers = #tpu.dot_dimension_numbers<[1], [0], [0], [1], [0, 0, 1, 1], [], []>} : vector<128x192xbf16>, vector<192x64xbf16>, vector<128x64xf32> -> vector<128x64xf32>
    %c0_3 = arith.constant 0 : index
    %c0_4 = arith.constant 0 : index
    %4 = vector.load %arg3[%c0_3, %c0_4] : memref<1x64xf32, #tpu.memory_space<vmem>>, vector<1x64xf32>
    %5 = vector.broadcast %4 : vector<1x64xf32> to vector<128x64xf32>
    %6 = arith.addf %3, %5 : vector<128x64xf32>
    %7 = arith.truncf %6 : vector<128x64xf32> to vector<128x64xbf16>
    %c0_5 = arith.constant 0 : index
    %c0_6 = arith.constant 0 : index
    %8 = vector.load %arg4[%c0_5, %c0_6] : memref<64x1024xbf16, #tpu.memory_space<vmem>>, vector<64x1024xbf16>
    %cst_7 = arith.constant dense<0.000000e+00> : vector<128x1024xf32>
    %9 = tpu.matmul %7, %8, %cst_7 {dimension_numbers = #tpu.dot_dimension_numbers<[1], [0], [0], [1], [0, 0, 1, 1], [], []>} : vector<128x64xbf16>, vector<64x1024xbf16>, vector<128x1024xf32> -> vector<128x1024xf32>
    %c0_8 = arith.constant 0 : index
    %c0_9 = arith.constant 0 : index
    %10 = vector.load %arg5[%c0_8, %c0_9] : memref<1x1024xf32, #tpu.memory_space<vmem>>, vector<1x1024xf32>
    %11 = vector.broadcast %10 : vector<1x1024xf32> to vector<128x1024xf32>
    %12 = arith.addf %9, %11 : vector<128x1024xf32>
    %13 = arith.truncf %12 : vector<128x1024xf32> to vector<128x1024xbf16>
    %c0_10 = arith.constant 0 : index
    %c0_11 = arith.constant 0 : index
    %14 = vector.load %arg6[%c0_10, %c0_11] : memref<1024x512xbf16, #tpu.memory_space<vmem>>, vector<1024x512xbf16>
    %cst_12 = arith.constant dense<0.000000e+00> : vector<128x512xf32>
    %15 = tpu.matmul %13, %14, %cst_12 {dimension_numbers = #tpu.dot_dimension_numbers<[1], [0], [0], [1], [0, 0, 1, 1], [], []>} : vector<128x1024xbf16>, vector<1024x512xbf16>, vector<128x512xf32> -> vector<128x512xf32>
    %c0_13 = arith.constant 0 : index
    %c0_14 = arith.constant 0 : index
    %16 = vector.load %arg7[%c0_13, %c0_14] : memref<1x512xf32, #tpu.memory_space<vmem>>, vector<1x512xf32>
    %17 = vector.broadcast %16 : vector<1x512xf32> to vector<128x512xf32>
    %18 = arith.addf %15, %17 : vector<128x512xf32>
    %cst_15 = arith.constant 0.000000e+00 : f32
    %19 = vector.broadcast %cst_15 : f32 to vector<128x512xf32>
    %20 = arith.maximumf %18, %19 : vector<128x512xf32>
    %21 = arith.truncf %20 : vector<128x512xf32> to vector<128x512xbf16>
    %c0_16 = arith.constant 0 : index
    %c0_17 = arith.constant 0 : index
    %22 = vector.load %arg8[%c0_16, %c0_17] : memref<512x128xbf16, #tpu.memory_space<vmem>>, vector<512x128xbf16>
    %cst_18 = arith.constant dense<0.000000e+00> : vector<128x128xf32>
    %23 = tpu.matmul %21, %22, %cst_18 {dimension_numbers = #tpu.dot_dimension_numbers<[1], [0], [0], [1], [0, 0, 1, 1], [], []>} : vector<128x512xbf16>, vector<512x128xbf16>, vector<128x128xf32> -> vector<128x128xf32>
    %c0_19 = arith.constant 0 : index
    %c0_20 = arith.constant 0 : index
    %24 = vector.load %arg9[%c0_19, %c0_20] : memref<1x128xf32, #tpu.memory_space<vmem>>, vector<1x128xf32>
    %25 = vector.broadcast %24 : vector<1x128xf32> to vector<128x128xf32>
    %26 = arith.addf %23, %25 : vector<128x128xf32>
    %c0_21 = arith.constant 0 : index
    %c0_22 = arith.constant 0 : index
    %27 = vector.load %arg10[%c0_21, %c0_22] : memref<128x128xf32, #tpu.memory_space<vmem>>, vector<128x128xf32>
    tpu.vector_store %arg10[%c0_21, %c0_22], %26 {strides = array<i32>} : memref<128x128xf32, #tpu.memory_space<vmem>>, vector<128x128xf32>,
    return
  }
  func.func @transform_0(%arg0: i32) -> (i32, i32) {
    %c0_i32 = arith.constant 0 : i32
    %c0_i32_0 = arith.constant 0 : i32
    return %arg0, %c0_i32 : i32, i32
  }
  func.func @transform_1(%arg0: i32) -> (i32, i32) {
    %c0_i32 = arith.constant 0 : i32
    %c0_i32_0 = arith.constant 0 : i32
    %c0_i32_1 = arith.constant 0 : i32
    return %c0_i32, %c0_i32_0 : i32, i32
  }
  func.func @transform_2(%arg0: i32) -> (i32, i32) {
    %c0_i32 = arith.constant 0 : i32
    %c0_i32_0 = arith.constant 0 : i32
    %c0_i32_1 = arith.constant 0 : i32
    return %c0_i32, %c0_i32_0 : i32, i32
  }
  func.func @transform_3(%arg0: i32) -> (i32, i32) {
    %c0_i32 = arith.constant 0 : i32
    %c0_i32_0 = arith.constant 0 : i32
    %c0_i32_1 = arith.constant 0 : i32
    return %c0_i32, %c0_i32_0 : i32, i32
  }
  func.func @transform_4(%arg0: i32) -> (i32, i32) {
    %c0_i32 = arith.constant 0 : i32
    %c0_i32_0 = arith.constant 0 : i32
    %c0_i32_1 = arith.constant 0 : i32
    return %c0_i32, %c0_i32_0 : i32, i32
  }
  func.func @transform_5(%arg0: i32) -> (i32, i32) {
    %c0_i32 = arith.constant 0 : i32
    %c0_i32_0 = arith.constant 0 : i32
    %c0_i32_1 = arith.constant 0 : i32
    return %c0_i32, %c0_i32_0 : i32, i32
  }
  func.func @transform_6(%arg0: i32) -> (i32, i32) {
    %c0_i32 = arith.constant 0 : i32
    %c0_i32_0 = arith.constant 0 : i32
    %c0_i32_1 = arith.constant 0 : i32
    return %c0_i32, %c0_i32_0 : i32, i32
  }
  func.func @transform_7(%arg0: i32) -> (i32, i32) {
    %c0_i32 = arith.constant 0 : i32
    %c0_i32_0 = arith.constant 0 : i32
    %c0_i32_1 = arith.constant 0 : i32
    return %c0_i32, %c0_i32_0 : i32, i32
  }
  func.func @transform_8(%arg0: i32) -> (i32, i32) {
    %c0_i32 = arith.constant 0 : i32
    %c0_i32_0 = arith.constant 0 : i32
    %c0_i32_1 = arith.constant 0 : i32
    return %c0_i32, %c0_i32_0 : i32, i32
  }
  func.func @transform_9(%arg0: i32) -> (i32, i32) {
    %c0_i32 = arith.constant 0 : i32
    %c0_i32_0 = arith.constant 0 : i32
    return %arg0, %c0_i32 : i32, i32
  }
}

</mosaic_0001>

<bundles_post_ra>
// kernel: tpu_custom_call.1
= control target key start
LH: loop header
LB: loop body
LE: loop exit
PB: predicated region body
PF: predicated region fallthrough
CT: control target
= control target key end

     0   :  { %14 = vsyncpa [#allocation3], 0  ;;  %s6375_s0 = inlined_call_operand.vmem [shape: f32[128,192], index: 0, kind: input, shape index: {}]   ;;  %s6376_s1 = inlined_call_operand.vmem [shape: bf16[192,64], index: 1, kind: input, shape index: {}]   ;;  %s6377_s2 = inlined_call_operand.vmem [shape: f32[1,64], index: 2, kind: input, shape index: {}]   ;;  %s6378_s3 = inlined_call_operand.vmem [shape: bf16[64,1024], index: 3, kind: input, shape index: {}]   ;;  %s6379_s4 = inlined_call_operand.vmem [shape: f32[1,1024], index: 4, kind: input, shape index: {}]   ;;  %s6380_s5 = inlined_call_operand.hbm [shape: bf16[1024,512], index: 5, kind: input, shape index: {}]   ;;  %s6381_s6 = inlined_call_operand.vmem [shape: f32[1,512], index: 6, kind: input, shape index: {}]   ;;  %s6382_s7 = inlined_call_operand.vmem [shape: bf16[512,128], index: 7, kind: input, shape index: {}]   ;;  %s6383_s8 = inlined_call_operand.vmem [shape: f32[1,128], index: 8, kind: input, shape index: {}]   ;;  %s6384_s9 = inlined_call_operand.hbm [shape: f32[128,128], index: 9, kind: output, shape index: {}]  }
   0x1   :  { %15 = vsyncpa [#allocation4], 0  ;;  %s5401_s30 = smov [#allocation2]   ;;  %s5353_s13 = scalar_lea.hbm %s6380_s5, 32768 }
   0x2   :  { %s31_s10 = sshll.u32 %s5401_s30, 4  ;;  %p5354_p0 = scmp.ne.s32.totalorder %s6380_s5, %s5353_s13  ;;  %s32_s10 = int_to_ptr.vmem [resolvable:$true] %s31_s10 }
   0x3   :  { %p5357_p1 = scmp.lt.u32.totalorder %s5353_s13, %s6380_s5 }
   0x5   :  { %p5359_p2 = pnand %p5357_p1, %p5354_p0 }
   0x7   :  { %5362 = shalt.err (!%p5359_p2)
}
   0x8   :  { %s5363_s18 = scalar_lea.vmem %s32_s10, 32768  ;;  %p5368_p4 = scmp.lt.s32.totalorder %s32_s10, %s32_s10 }
   0x9   :  { %p5364_p3 = scmp.ne.s32.totalorder %s32_s10, %s5363_s18  ;;  %p5369_p5 = scmp.lt.s32.totalorder %s5363_s18, %s5363_s18 }
   0xb   :  { %p5370_p6 = por %p5369_p5, %p5368_p4 }
   0xd   :  { %p5371_p7 = pnand %p5370_p6, %p5364_p3 }
   0xf   :  { %5374 = shalt.err (!%p5371_p7)
}
  0x10   :  { %s5402_s19 = smov 256   ;;  %s5403_s20 = smov 16  }
  0x11   :  { %37 = dma.hbm_to_vmem [thread:$0]  %s6380_s5, 32768, %s32_s10, [#allocation3], %s5402_s19, %s5402_s19, %s5403_s20  }
  0x12   :  { %5397 = dma.done.wait [#allocation3], 32768  }
  0x13   :  { %5398 = vsyncadd [#allocation3], 4294934528  ;;  %v5404_v0 = vmov 0   ;;  %v4924_v1 = vld [vmem:[%s6376_s1] sm:$0xff]   ;;  %v4925_v2 = vld [vmem:[%s6376_s1 + $0x8] sm:$0xff]   ;;  %vm199_vm0 = vcmask 523264  }
  0x14   :  { %224 = vmatprep.subr.bf16.mxu0 %v5404_v0  ;;  %639 = vmatprep.mubr.bf16.mxu1 %v5404_v0  ;;  %v4926_v3 = vld [vmem:[%s6376_s1 + $0x10] sm:$0xff]   ;;  %v4927_v4 = vld [vmem:[%s6376_s1 + $0x18] sm:$0xff]   ;;  %v49_v5 = vld [vmem:[%s6375_s0 + $0x8] sm:$0xff] }
  0x15   :  { %225 = vmatpush1.bf16.msra.mxu0 %v4924_v1  ;;  %v51_v6 = vld [vmem:[%s6375_s0 + $0x18] sm:$0xff]  ;;  %v4928_v8 = vld [vmem:[%s6376_s1 + $0x20] sm:$0xff]   ;;  %v4929_v9 = vld [vmem:[%s6376_s1 + $0x28] sm:$0xff]  }
  0x16   :  { %226 = vmatprep.subr.bf16.mxu0 %v5404_v0  ;;  %v81_v7 = vpack.c.bf16 %v51_v6, %v49_v5  ;;  %v4930_v10 = vld [vmem:[%s6376_s1 + $0x30] sm:$0xff]   ;;  %v329_v11 = vld [vmem:[%s6378_s3] sm:$0xff]  ;;  %v4931_v15 = vld [vmem:[%s6376_s1 + $0x38] sm:$0xff]  }
  0x17   :  { %v333_v12 = vld [vmem:[%s6378_s3 + $0x20] sm:$0xff]  ;;  %v4933_v26 = vld [vmem:[%s6376_s1 + $0x48] sm:$0xff]   ;;  %v4934_v29 = vld [vmem:[%s6376_s1 + $0x50] sm:$0xff]  }
  0x18   :  { %4164 = vmatprep.mubr.msk.bf16.mxu0 %vm199_vm0, %v81_v7  ;;  %v337_v13 = vld [vmem:[%s6378_s3 + $0x40] sm:$0xff]  ;;  %v4173_v16 = vcombine.high %v329_v11, %v333_v12  ;;  %v4172_v17 = vcombine.low %v329_v11, %v333_v12  ;;  %v4935_v31 = vld [vmem:[%s6376_s1 + $0x58] sm:$0xff]   ;;  %v50_v33 = vld [vmem:[%s6375_s0 + $0x10] sm:$0xff] }
  0x19   :  { %227 = vmatpush1.bf16.msra.mxu0 %v4925_v2  ;;  %v341_v14 = vld [vmem:[%s6378_s3 + $0x60] sm:$0xff]  ;;  %v53_v34 = vld [vmem:[%s6375_s0 + $0x28] sm:$0xff]  ;;  %v55_v35 = vld [vmem:[%s6375_s0 + $0x38] sm:$0xff] }
  0x1a   :  { %228 = vmatprep.subr.bf16.mxu0 %v5404_v0  ;;  %v345_v18 = vld [vmem:[%s6378_s3 + $0x80] sm:$0xff]  ;;  %v4181_v20 = vcombine.high %v337_v13, %v341_v14  ;;  %4653 = vmatprep.subr.bf16.mxu1 %v4173_v16  ;;  %v4180_v22 = vcombine.low %v337_v13, %v341_v14  ;;  %v83_v37 = vpack.c.bf16 %v55_v35, %v53_v34  ;;  %v54_v39 = vld [vmem:[%s6375_s0 + $0x30] sm:$0xff]  ;;  %v57_v40 = vld [vmem:[%s6375_s0 + $0x48] sm:$0xff] }
  0x1b   :  { %v349_v19 = vld [vmem:[%s6378_s3 + $0xa0] sm:$0xff]  ;;  %4657 = vmatpush1.bf16.msra.mxu1 %v4172_v17  ;;  %v59_v41 = vld [vmem:[%s6375_s0 + $0x58] sm:$0xff]  ;;  %v58_v45 = vld [vmem:[%s6375_s0 + $0x50] sm:$0xff] }
  0x1c   :  { %v4932_v21 = vld [vmem:[%s6376_s1 + $0x40] sm:$0xff]   ;;  %4654 = vmatprep.subr.bf16.mxu1 %v4181_v20  ;;  %v4189_v25 = vcombine.high %v345_v18, %v349_v19  ;;  %v4188_v27 = vcombine.low %v345_v18, %v349_v19  ;;  %v85_v43 = vpack.c.bf16 %v59_v41, %v57_v40  ;;  %v61_v46 = vld [vmem:[%s6375_s0 + $0x68] sm:$0xff]  ;;  %v63_v47 = vld [vmem:[%s6375_s0 + $0x78] sm:$0xff] }
  0x1d   :  { %229 = vmatpush1.bf16.msra.mxu0 %v4926_v3  ;;  %v353_v23 = vld [vmem:[%s6378_s3 + $0xc0] sm:$0xff]  ;;  %v87_v49 = vpack.c.bf16 %v63_v47, %v61_v46  ;;  %v62_v51 = vld [vmem:[%s6375_s0 + $0x70] sm:$0xff]  ;;  %v65_v52 = vld [vmem:[%s6375_s0 + $0x88] sm:$0xff] }
  0x1e   :  { %230 = vmatprep.subr.bf16.mxu0 %v5404_v0  ;;  %v357_v24 = vld [vmem:[%s6378_s3 + $0xe0] sm:$0xff]  ;;  %v67_v53 = vld [vmem:[%s6375_s0 + $0x98] sm:$0xff]  ;;  %v66_v57 = vld [vmem:[%s6375_s0 + $0x90] sm:$0xff] }
  0x1f   :  { %4658 = vmatpush1.bf16.msra.mxu1 %v4180_v22  ;;  %v4197_v28 = vcombine.high %v353_v23, %v357_v24  ;;  %v4196_v30 = vcombine.low %v353_v23, %v357_v24  ;;  %v48_v32 = vld [vmem:[%s6375_s0] sm:$0xff]  ;;  %v89_v55 = vpack.c.bf16 %v67_v53, %v65_v52  ;;  %v69_v58 = vld [vmem:[%s6375_s0 + $0xa8] sm:$0xff]  ;;  %v71_v59 = vld [vmem:[%s6375_s0 + $0xb8] sm:$0xff] }
  0x20   :  { %4655 = vmatprep.subr.bf16.mxu1 %v4189_v25  ;;  %v80_v36 = vpack.c.bf16 %v50_v33, %v48_v32  ;;  %v52_v38 = vld [vmem:[%s6375_s0 + $0x20] sm:$0xff]  ;;  %v91_v61 = vpack.c.bf16 %v71_v59, %v69_v58  ;;  %v70_v63 = vld [vmem:[%s6375_s0 + $0xb0] sm:$0xff]  ;;  %v73_v1 = vld [vmem:[%s6375_s0 + $0xc8] sm:$0xff] }
  0x21   :  { %231 = vmatpush1.bf16.msra.mxu0 %v4927_v4  ;;  %v82_v42 = vpack.c.bf16 %v54_v39, %v52_v38  ;;  %v56_v44 = vld [vmem:[%s6375_s0 + $0x40] sm:$0xff]  ;;  %v75_v2 = vld [vmem:[%s6375_s0 + $0xd8] sm:$0xff]  ;;  %v74_v6 = vld [vmem:[%s6375_s0 + $0xd0] sm:$0xff] }
  0x22   :  { %232 = vmatprep.subr.bf16.mxu0 %v5404_v0  ;;  %v84_v48 = vpack.c.bf16 %v58_v45, %v56_v44  ;;  %v60_v50 = vld [vmem:[%s6375_s0 + $0x60] sm:$0xff]  ;;  %v93_v4 = vpack.c.bf16 %v75_v2, %v73_v1  ;;  %v77_v7 = vld [vmem:[%s6375_s0 + $0xe8] sm:$0xff]  ;;  %v78_v12 = vld [vmem:[%s6375_s0 + $0xf0] sm:$0xff] }
  0x23   :  { %4659 = vmatpush1.bf16.msra.mxu1 %v4188_v27  ;;  %v86_v54 = vpack.c.bf16 %v62_v51, %v60_v50  ;;  %v64_v56 = vld [vmem:[%s6375_s0 + $0x80] sm:$0xff]  ;;  %v331_v14 = vld [vmem:[%s6378_s3 + $0x10] sm:$0xff]  ;;  %v330_v18 = vld [vmem:[%s6378_s3 + $0x8] sm:$0xff] }
  0x24   :  { %4656 = vmatprep.subr.bf16.mxu1 %v4197_v28  ;;  %v88_v60 = vpack.c.bf16 %v66_v57, %v64_v56  ;;  %v68_v62 = vld [vmem:[%s6375_s0 + $0xa0] sm:$0xff]  ;;  %v334_v19 = vld [vmem:[%s6378_s3 + $0x28] sm:$0xff]  ;;  %v347_v33 = vld [vmem:[%s6378_s3 + $0x90] sm:$0xff] }
  0x25   :  { %233 = vmatpush1.bf16.msra.mxu0 %v4928_v8  ;;  %v90_v3 = vpack.c.bf16 %v70_v63, %v68_v62  ;;  %v72_v5 = vld [vmem:[%s6375_s0 + $0xc0] sm:$0xff]  ;;  %v79_v8 = vld [vmem:[%s6375_s0 + $0xf8] sm:$0xff]  ;;  %v351_v34 = vld [vmem:[%s6378_s3 + $0xb0] sm:$0xff] }
  0x26   :  { %234 = vmatprep.subr.bf16.mxu0 %v5404_v0  ;;  %v76_v11 = vld [vmem:[%s6375_s0 + $0xe0] sm:$0xff]  ;;  %v4193_v38 = vcombine.high %v347_v33, %v351_v34  ;;  %v355_v40 = vld [vmem:[%s6378_s3 + $0xd0] sm:$0xff]  ;;  %v4192_v45 = vcombine.low %v347_v33, %v351_v34  ;;  %v338_v52 = vld [vmem:[%s6378_s3 + $0x48] sm:$0xff] }
  0x27   :  { %4660 = vmatpush1.bf16.msra.mxu1 %v4196_v30  ;;  %v94_v13 = vpack.c.bf16 %v78_v12, %v76_v11  ;;  %v359_v41 = vld [vmem:[%s6378_s3 + $0xf0] sm:$0xff]  ;;  %v342_v53 = vld [vmem:[%s6378_s3 + $0x68] sm:$0xff]  ;;  %v5732_v11 = vld [vmem:[%s6378_s3 + $0x18] sm:$0xff] }
  0x28   :  { %v4201_v47 = vcombine.high %v355_v40, %v359_v41  ;;  %v4183_v58 = vcombine.high %v338_v52, %v342_v53  ;;  %v346_v59 = vld [vmem:[%s6378_s3 + $0x88] sm:$0xff]  ;;  %v4182_v62 = vcombine.low %v338_v52, %v342_v53  ;;  %v5741_v12 = vld [vmem:[%s6378_s3 + $0x38] sm:$0xff]  ;;  %v4954_v34 = vld [vmem:[#allocation2 + $0x60] ss:$16 sps:$4 sm:$0xff]  }
  0x29   :  { %235 = vmatpush1.bf16.msra.mxu0 %v4929_v9  ;;  %v92_v9 = vpack.c.bf16 %v74_v6, %v72_v5  ;;  %v354_v6 = vld [vmem:[%s6378_s3 + $0xc8] sm:$0xff]  ;;  %v4974_v52 = vld [vmem:[#allocation2 + $0xc4] ss:$16 sps:$4 sm:$0xff]  }
  0x2a   :  { %236 = vmatprep.subr.bf16.mxu0 %v5404_v0 }
  0x2d   :  { %237 = vmatpush1.bf16.msra.mxu0 %v4930_v10  ;;  %v95_v10 = vpack.c.bf16 %v79_v8, %v77_v7  ;;  %v358_v7 = vld [vmem:[%s6378_s3 + $0xe8] sm:$0xff] }
  0x2e   :  { %238 = vmatprep.subr.bf16.mxu0 %v5404_v0 }
  0x31   :  { %239 = vmatpush1.bf16.msra.mxu0 %v4931_v15  ;;  %v335_v15 = vld [vmem:[%s6378_s3 + $0x30] sm:$0xff] }
  0x32   :  { %240 = vmatprep.subr.bf16.mxu0 %v5404_v0 }
  0x35   :  { %241 = vmatpush1.bf16.msra.mxu0 %v4932_v21  ;;  %v4175_v21 = vcombine.high %v330_v18, %v334_v19 }
  0x36   :  { %242 = vmatprep.subr.bf16.mxu0 %v5404_v0 }
  0x37   :  { %700 = vmatprep.subr.bf16.mxu1 %v4175_v21  ;;  %v4942_v21 = vld [vmem:[#allocation2 + $0x20] ss:$16 sps:$4 sm:$0xff]  }
  0x39   :  { %243 = vmatpush1.bf16.msra.mxu0 %v4933_v26  ;;  %v339_v26 = vld [vmem:[%s6378_s3 + $0x50] sm:$0xff] }
  0x3a   :  { %244 = vmatprep.subr.bf16.mxu0 %v5404_v0 }
  0x3d   :  { %245 = vmatpush1.bf16.msra.mxu0 %v4934_v29 }
  0x3e   :  { %246 = vmatprep.subr.bf16.mxu0 %v5404_v0 }
  0x41   :  { %247 = vmatpush1.bf16.msra.mxu0 %v4935_v31 }
  0x42   :  { %587 = vmatprep.subr.bf16.mxu0 %v4173_v16  ;;  %v4177_v16 = vcombine.high %v331_v14, %v335_v15 }
  0x44   :  { %257 = vmatmul.mubr.bf16.vlgmr.msra.gmra.mrb[0].mxu0 %v80_v36 }
  0x45   :  { %4165 = vmatprep.mubr.msk.bf16.mxu0 %vm199_vm0, %v83_v37  ;;  %588 = vmatpush1.bf16.msra.mxu0 %v4172_v17  ;;  %v4176_v17 = vcombine.low %v331_v14, %v335_v15  ;;  %v4938_v14 = vld [vmem:[#allocation2 + $0x4] ss:$16 sps:$4 sm:$0xff]  }
  0x46   :  { %589 = vmatprep.subr.bf16.mxu0 %v4181_v20  ;;  %v4174_v20 = vcombine.low %v330_v18, %v334_v19  ;;  %v4944_v18 = vld [vmem:[#allocation2 + $0x24] ss:$16 sps:$4 sm:$0xff]  }
  0x49   :  { %590 = vmatpush1.bf16.msra.mxu0 %v4180_v22  ;;  %v5663_v22 = vld [vmem:[%s6377_s2] ss:$0 sm:$0xff] }
  0x4a   :  { %591 = vmatprep.subr.bf16.mxu0 %v4189_v25 }
  0x4c   :  { %265 = vmatmul.mubr.bf16.gmra.mrb[4].mxu0 %v82_v42 }
  0x4d   :  { %4166 = vmatprep.mubr.msk.bf16.mxu0 %vm199_vm0, %v85_v43  ;;  %592 = vmatpush1.bf16.msra.mxu0 %v4188_v27  ;;  %v343_v27 = vld [vmem:[%s6378_s3 + $0x70] sm:$0xff] }
  0x4e   :  { %593 = vmatprep.subr.bf16.mxu0 %v4197_v28  ;;  %v4185_v32 = vcombine.high %v339_v26, %v343_v27  ;;  %v4184_v36 = vcombine.low %v339_v26, %v343_v27  ;;  %v4948_v27 = vld [vmem:[#allocation2 + $0x40] ss:$16 sps:$4 sm:$0xff]  }
  0x51   :  { %594 = vmatpush1.bf16.msra.mxu0 %v4196_v30 }
  0x52   :  { %813 = vmatprep.subr.bf16.mxu0 %v4177_v16 }
  0x54   :  { %273 = vmatmul.mubr.bf16.gmra.mrb[8].mxu0 %v84_v48 }
  0x55   :  { %4167 = vmatprep.mubr.msk.bf16.mxu0 %vm199_vm0, %v87_v49  ;;  %v4200_v49 = vcombine.low %v355_v40, %v359_v41  ;;  %v4962_v40 = vld [vmem:[#allocation2 + $0x84] ss:$16 sps:$4 sm:$0xff]  }
  0x5c   :  { %281 = vmatmul.mubr.bf16.gmra.mrb[12].mxu0 %v86_v54 }
  0x5d   :  { %4168 = vmatprep.mubr.msk.bf16.mxu0 %vm199_vm0, %v89_v55 }
  0x64   :  { %289 = vmatmul.mubr.bf16.gmra.mrb[16].mxu0 %v88_v60  ;;  %v350_v60 = vld [vmem:[%s6378_s3 + $0xa8] sm:$0xff] }
  0x65   :  { %4169 = vmatprep.mubr.msk.bf16.mxu0 %vm199_vm0, %v91_v61  ;;  %v4191_v1 = vcombine.high %v346_v59, %v350_v60 }
  0x6c   :  { %297 = vmatmul.mubr.bf16.gmra.mrb[20].mxu0 %v90_v3 }
  0x6d   :  { %4170 = vmatprep.mubr.msk.bf16.mxu0 %vm199_vm0, %v93_v4 }
  0x74   :  { %305 = vmatmul.mubr.bf16.gmra.mrb[24].mxu0 %v92_v9  ;;  %v4190_v9 = vcombine.low %v346_v59, %v350_v60 }
  0x75   :  { %4171 = vmatprep.mubr.msk.bf16.mxu0 %vm199_vm0, %v95_v10  ;;  %v4199_v10 = vcombine.high %v354_v6, %v358_v7 }
  0x7c   :  { %313 = vmatmul.mubr.bf16.gmra.mrb[28].mxu0 %v94_v13  ;;  %v4936_v13 = vld [vmem:[#allocation2] ss:$16 sps:$4 sm:$0xff]  }
  0x7d   :  { %619 = vmatprep.mubr.bf16.mxu0 %v5404_v0 }
 0x117   :  { %v258_v23 = vpop.f32.mrb[0].mxu0 }
 0x118   :  { %v260_v24 = vpop.f32.mrb[1].mxu0  ;;  %v259_v28 = vadd.f32 %v5663_v22, %v258_v23 }
 0x119   :  { %v261_v25 = vpop.f32.mrb[2].mxu0 }
 0x11a   :  { %v262_v29 = vadd.f32 %v5663_v22, %v261_v25  ;;  %v263_v30 = vpop.f32.mrb[3].mxu0 }
 0x11c   :  { %v5673_v31 = vpack.c.bf16 %v262_v29, %v259_v28  ;;  %v4950_v28 = vld [vmem:[#allocation2 + $0x44] ss:$16 sps:$4 sm:$0xff]  }
 0x11e   :  { %4204 = vmatmul.mubr.msk.bf16.vlgmr.msra.gmra.mrb[32].mxu0 %vm199_vm0, %v5673_v31 }
 0x11f   :  { %v266_v35 = vpop.f32.mrb[4].mxu0  ;;  %814 = vmatpush1.bf16.msra.mxu0 %v4176_v17  ;;  %629 = vmatprep.mubr.bf16.mxu0 %v5404_v0  ;;  %v4198_v17 = vcombine.low %v354_v6, %v358_v7  ;;  %v4998_v6 = vld [vmem:[#allocation2 + $0x144] ss:$16 sps:$4 sm:$0xff]  }
 0x120   :  { %v268_v37 = vpop.f32.mrb[5].mxu0  ;;  %815 = vmatprep.subr.bf16.mxu0 %v4185_v32  ;;  %v267_v42 = vadd.f32 %v5663_v22, %v266_v35  ;;  %v4956_v32 = vld [vmem:[#allocation2 + $0x64] ss:$16 sps:$4 sm:$0xff]  }
 0x121   :  { %v269_v39 = vpop.f32.mrb[6].mxu0 }
 0x122   :  { %v270_v43 = vadd.f32 %v5663_v22, %v269_v39  ;;  %v271_v44 = vpop.f32.mrb[7].mxu0  ;;  %v4960_v39 = vld [vmem:[#allocation2 + $0x80] ss:$16 sps:$4 sm:$0xff]  }
 0x123   :  { %816 = vmatpush1.bf16.msra.mxu0 %v4184_v36 }
 0x124   :  { %v5692_v46 = vpack.c.bf16 %v270_v43, %v267_v42  ;;  %817 = vmatprep.subr.bf16.mxu0 %v4193_v38  ;;  %v4968_v43 = vld [vmem:[#allocation2 + $0xa4] ss:$16 sps:$4 sm:$0xff]  }
 0x126   :  { %4205 = vmatmul.mubr.msk.bf16.gmra.mrb[36].mxu0 %vm199_vm0, %v5692_v46 }
 0x127   :  { %v274_v48 = vpop.f32.mrb[8].mxu0  ;;  %818 = vmatpush1.bf16.msra.mxu0 %v4192_v45  ;;  %845 = vmatprep.mubr.bf16.mxu0 %v5404_v0  ;;  %v4966_v45 = vld [vmem:[#allocation2 + $0xa0] ss:$16 sps:$4 sm:$0xff]  }
 0x128   :  { %v276_v50 = vpop.f32.mrb[9].mxu0  ;;  %819 = vmatprep.subr.bf16.mxu0 %v4201_v47  ;;  %v275_v54 = vadd.f32 %v5663_v22, %v274_v48 }
 0x129   :  { %v277_v51 = vpop.f32.mrb[10].mxu0 }
 0x12a   :  { %v278_v55 = vadd.f32 %v5663_v22, %v277_v51  ;;  %v279_v56 = vpop.f32.mrb[11].mxu0  ;;  %v4972_v51 = vld [vmem:[#allocation2 + $0xc0] ss:$16 sps:$4 sm:$0xff]  }
 0x12b   :  { %820 = vmatpush1.bf16.msra.mxu0 %v4200_v49 }
 0x12c   :  { %v5705_v57 = vpack.c.bf16 %v278_v55, %v275_v54  ;;  %2661 = vmatprep.subr.bf16.mxu0 %v4938_v14  ;;  %v4980_v55 = vld [vmem:[#allocation2 + $0xe4] ss:$16 sps:$4 sm:$0xff]  }
 0x12d   :  { %v5004_v14 = vld [vmem:[#allocation2 + $0x164] ss:$16 sps:$4 sm:$0xff]  }
 0x12e   :  { %4206 = vmatmul.mubr.msk.bf16.vlgmr.msra.gmra.mrb[0].mxu1 %vm199_vm0, %v5705_v57  ;;  %4220 = vmatmul.mubr.msk.bf16.vlgmr.msra.gmra.mrb[40].mxu0 %vm199_vm0, %v5673_v31 }
 0x12f   :  { %701 = vmatpush1.bf16.msra.mxu1 %v4174_v20  ;;  %v282_v61 = vpop.f32.mrb[12].mxu0  ;;  %649 = vmatprep.mubr.bf16.mxu1 %v5404_v0  ;;  %v4179_v20 = vcombine.high %v5732_v11, %v5741_v12 }
 0x130   :  { %v284_v63 = vpop.f32.mrb[13].mxu0  ;;  %855 = vmatprep.mubr.bf16.mxu0 %v5404_v0  ;;  %702 = vmatprep.subr.bf16.mxu1 %v4183_v58  ;;  %v283_v3 = vadd.f32 %v5663_v22, %v282_v61  ;;  %v4978_v58 = vld [vmem:[#allocation2 + $0xe0] ss:$16 sps:$4 sm:$0xff]  }
 0x131   :  { %v285_v2 = vpop.f32.mrb[14].mxu0  ;;  %2662 = vmatpush1.bf16.msra.mxu0 %v4936_v13  ;;  %v4984_v63 = vld [vmem:[#allocation2 + $0x100] ss:$16 sps:$4 sm:$0xff]   ;;  %v352_v13 = vld [vmem:[%s6378_s3 + $0xb8] sm:$0xff] }
 0x132   :  { %v286_v4 = vadd.f32 %v5663_v22, %v285_v2  ;;  %v287_v5 = vpop.f32.mrb[15].mxu0  ;;  %2663 = vmatprep.subr.bf16.mxu0 %v4944_v18  ;;  %v4992_v2 = vld [vmem:[#allocation2 + $0x124] ss:$16 sps:$4 sm:$0xff]  }
 0x133   :  { %703 = vmatpush1.bf16.msra.mxu1 %v4182_v62  ;;  %v4178_v5 = vcombine.low %v5732_v11, %v5741_v12  ;;  %v5010_v18 = vld [vmem:[#allocation2 + $0x184] ss:$16 sps:$4 sm:$0xff]  }
 0x134   :  { %v5727_v8 = vpack.c.bf16 %v286_v4, %v283_v3  ;;  %704 = vmatprep.subr.bf16.mxu1 %v4191_v1  ;;  %v4986_v1 = vld [vmem:[#allocation2 + $0x104] ss:$16 sps:$4 sm:$0xff]   ;;  %v340_v3 = vld [vmem:[%s6378_s3 + $0x58] sm:$0xff] }
 0x135   :  { %2664 = vmatpush1.bf16.msra.mxu0 %v4942_v21  ;;  %v344_v4 = vld [vmem:[%s6378_s3 + $0x78] sm:$0xff]  ;;  %v5008_v21 = vld [vmem:[#allocation2 + $0x180] ss:$16 sps:$4 sm:$0xff]  }
 0x136   :  { %4207 = vmatmul.mubr.msk.bf16.gmra.mrb[4].mxu1 %vm199_vm0, %v5727_v8  ;;  %4221 = vmatmul.mubr.msk.bf16.gmra.mrb[44].mxu0 %vm199_vm0, %v5692_v46  ;;  %v4187_v7 = vcombine.high %v340_v3, %v344_v4  ;;  %v4186_v11 = vcombine.low %v340_v3, %v344_v4 }
 0x137   :  { %v290_v15 = vpop.f32.mrb[16].mxu0  ;;  %659 = vmatprep.mubr.bf16.mxu1 %v5404_v0  ;;  %865 = vmatprep.mubr.bf16.mxu0 %v5404_v0 }
 0x138   :  { %v292_v16 = vpop.f32.mrb[17].mxu0  ;;  %705 = vmatpush1.bf16.msra.mxu1 %v4190_v9  ;;  %v291_v23 = vadd.f32 %v5663_v22, %v290_v15  ;;  %2665 = vmatprep.subr.bf16.mxu0 %v4950_v28  ;;  %v4996_v9 = vld [vmem:[#allocation2 + $0x140] ss:$16 sps:$4 sm:$0xff]   ;;  %v5022_v28 = vld [vmem:[#allocation2 + $0x1c4] ss:$16 sps:$4 sm:$0xff]  }
 0x139   :  { %v293_v19 = vpop.f32.mrb[18].mxu0  ;;  %706 = vmatprep.subr.bf16.mxu1 %v4199_v10  ;;  %2666 = vmatpush1.bf16.msra.mxu0 %v4948_v27  ;;  %v348_v10 = vld [vmem:[%s6378_s3 + $0x98] sm:$0xff]  ;;  %v5002_v15 = vld [vmem:[#allocation2 + $0x160] ss:$16 sps:$4 sm:$0xff]  }
 0x13a   :  { %v294_v24 = vadd.f32 %v5663_v22, %v293_v19  ;;  %v295_v25 = vpop.f32.mrb[19].mxu0  ;;  %2667 = vmatprep.subr.bf16.mxu0 %v4956_v32  ;;  %v4195_v12 = vcombine.high %v348_v10, %v352_v13  ;;  %v356_v16 = vld [vmem:[%s6378_s3 + $0xd8] sm:$0xff]  ;;  %v4194_v19 = vcombine.low %v348_v10, %v352_v13  ;;  %v5014_v27 = vld [vmem:[#allocation2 + $0x1a0] ss:$16 sps:$4 sm:$0xff]  }
 0x13b   :  { %v4941_v25 = vld [vmem:[#allocation2 + $0xc] ss:$16 sps:$4 sm:$0xff]   ;;  %v5026_v32 = vld [vmem:[#allocation2 + $0x1e0] ss:$16 sps:$4 sm:$0xff]  }
 0x13c   :  { %v5749_v26 = vpack.c.bf16 %v294_v24, %v291_v23  ;;  %707 = vmatpush1.bf16.msra.mxu1 %v4198_v17  ;;  %v360_v17 = vld [vmem:[%s6378_s3 + $0xf8] sm:$0xff]  ;;  %v5016_v23 = vld [vmem:[#allocation2 + $0x1a4] ss:$16 sps:$4 sm:$0xff]  }
 0x13d   :  { %926 = vmatprep.subr.bf16.mxu1 %v4179_v20  ;;  %2668 = vmatpush1.bf16.msra.mxu0 %v4954_v34  ;;  %v4203_v20 = vcombine.high %v356_v16, %v360_v17  ;;  %v4202_v24 = vcombine.low %v356_v16, %v360_v17  ;;  %v4939_v34 = vld [vmem:[#allocation2 + $0x8] ss:$16 sps:$4 sm:$0xff]   ;;  %v5032_v16 = vld [vmem:[#allocation2 + $0x200] ss:$16 sps:$4 sm:$0xff]  }
 0x13e   :  { %4208 = vmatmul.mubr.msk.bf16.gmra.mrb[8].mxu1 %vm199_vm0, %v5749_v26  ;;  %4222 = vmatmul.mubr.msk.bf16.gmra.mrb[48].mxu0 %vm199_vm0, %v5705_v57  ;;  %v5035_v17 = vld [vmem:[#allocation2 + $0x208] ss:$16 sps:$4 sm:$0xff]  }
 0x13f   :  { %v298_v29 = vpop.f32.mrb[20].mxu0  ;;  %669 = vmatprep.mubr.bf16.mxu1 %v5404_v0  ;;  %875 = vmatprep.mubr.bf16.mxu0 %v5404_v0 }
 0x140   :  { %v300_v30 = vpop.f32.mrb[21].mxu0  ;;  %v299_v35 = vadd.f32 %v5663_v22, %v298_v29  ;;  %2669 = vmatprep.subr.bf16.mxu0 %v4962_v40  ;;  %v5020_v29 = vld [vmem:[#allocation2 + $0x1c0] ss:$16 sps:$4 sm:$0xff]   ;;  %v4959_v40 = vld [vmem:[#allocation2 + $0x6c] ss:$16 sps:$4 sm:$0xff]  }
 0x141   :  { %v301_v33 = vpop.f32.mrb[22].mxu0  ;;  %2670 = vmatpush1.bf16.msra.mxu0 %v4960_v39  ;;  %v5028_v30 = vld [vmem:[#allocation2 + $0x1e4] ss:$16 sps:$4 sm:$0xff]   ;;  %v4951_v39 = vld [vmem:[#allocation2 + $0x48] ss:$16 sps:$4 sm:$0xff]  }
 0x142   :  { %v302_v36 = vadd.f32 %v5663_v22, %v301_v33  ;;  %v303_v37 = vpop.f32.mrb[23].mxu0  ;;  %2671 = vmatprep.subr.bf16.mxu0 %v4968_v43  ;;  %v5034_v33 = vld [vmem:[#allocation2 + $0x204] ss:$16 sps:$4 sm:$0xff]   ;;  %v4971_v43 = vld [vmem:[#allocation2 + $0xac] ss:$16 sps:$4 sm:$0xff]  }
 0x143   :  { %v4953_v37 = vld [vmem:[#allocation2 + $0x4c] ss:$16 sps:$4 sm:$0xff]  }
 0x144   :  { %v5759_v38 = vpack.c.bf16 %v302_v36, %v299_v35  ;;  %v4947_v35 = vld [vmem:[#allocation2 + $0x2c] ss:$16 sps:$4 sm:$0xff]   ;;  %v4945_v36 = vld [vmem:[#allocation2 + $0x28] ss:$16 sps:$4 sm:$0xff]  }
 0x145   :  { %2672 = vmatpush1.bf16.msra.mxu0 %v4966_v45  ;;  %v4977_v45 = vld [vmem:[#allocation2 + $0xcc] ss:$16 sps:$4 sm:$0xff]  }
 0x146   :  { %4209 = vmatmul.mubr.msk.bf16.gmra.mrb[12].mxu1 %vm199_vm0, %v5759_v38  ;;  %4223 = vmatmul.mubr.msk.bf16.gmra.mrb[52].mxu0 %vm199_vm0, %v5727_v8 }
 0x147   :  { %v306_v41 = vpop.f32.mrb[24].mxu0  ;;  %679 = vmatprep.mubr.bf16.mxu1 %v5404_v0  ;;  %885 = vmatprep.mubr.bf16.mxu0 %v5404_v0 }
 0x148   :  { %v308_v42 = vpop.f32.mrb[25].mxu0  ;;  %v307_v47 = vadd.f32 %v5663_v22, %v306_v41  ;;  %2673 = vmatprep.subr.bf16.mxu0 %v4974_v52  ;;  %v4957_v41 = vld [vmem:[#allocation2 + $0x68] ss:$16 sps:$4 sm:$0xff]  }
 0x149   :  { %v309_v44 = vpop.f32.mrb[26].mxu0  ;;  %2674 = vmatpush1.bf16.msra.mxu0 %v4972_v51  ;;  %v4965_v42 = vld [vmem:[#allocation2 + $0x8c] ss:$16 sps:$4 sm:$0xff]   ;;  %v4993_v52 = vld [vmem:[#allocation2 + $0x128] ss:$16 sps:$4 sm:$0xff]  }
 0x14a   :  { %v310_v48 = vadd.f32 %v5663_v22, %v309_v44  ;;  %v311_v49 = vpop.f32.mrb[27].mxu0  ;;  %2675 = vmatprep.subr.bf16.mxu0 %v4980_v55  ;;  %v4969_v44 = vld [vmem:[#allocation2 + $0xa8] ss:$16 sps:$4 sm:$0xff]   ;;  %v4995_v51 = vld [vmem:[#allocation2 + $0x12c] ss:$16 sps:$4 sm:$0xff]  }
 0x14b   :  { %v4989_v49 = vld [vmem:[#allocation2 + $0x10c] ss:$16 sps:$4 sm:$0xff]   ;;  %v5005_v55 = vld [vmem:[#allocation2 + $0x168] ss:$16 sps:$4 sm:$0xff]  }
 0x14c   :  { %v5769_v50 = vpack.c.bf16 %v310_v48, %v307_v47  ;;  %v4983_v47 = vld [vmem:[#allocation2 + $0xec] ss:$16 sps:$4 sm:$0xff]   ;;  %v4981_v48 = vld [vmem:[#allocation2 + $0xe8] ss:$16 sps:$4 sm:$0xff]  }
 0x14d   :  { %2676 = vmatpush1.bf16.msra.mxu0 %v4978_v58  ;;  %v5019_v58 = vld [vmem:[#allocation2 + $0x1ac] ss:$16 sps:$4 sm:$0xff]  }
 0x14e   :  { %4210 = vmatmul.mubr.msk.bf16.gmra.mrb[16].mxu1 %vm199_vm0, %v5769_v50  ;;  %4224 = vmatmul.mubr.msk.bf16.gmra.mrb[56].mxu0 %vm199_vm0, %v5749_v26 }
 0x14f   :  { %v314_v53 = vpop.f32.mrb[28].mxu0  ;;  %689 = vmatprep.mubr.bf16.mxu1 %v5404_v0  ;;  %895 = vmatprep.mubr.bf16.mxu0 %v5404_v0 }
 0x150   :  { %v316_v54 = vpop.f32.mrb[29].mxu0  ;;  %v315_v59 = vadd.f32 %v5663_v22, %v314_v53  ;;  %2677 = vmatprep.subr.bf16.mxu0 %v4986_v1  ;;  %v5001_v53 = vld [vmem:[#allocation2 + $0x14c] ss:$16 sps:$4 sm:$0xff]  }
 0x151   :  { %v317_v56 = vpop.f32.mrb[30].mxu0  ;;  %2678 = vmatpush1.bf16.msra.mxu0 %v4984_v63  ;;  %v5007_v54 = vld [vmem:[#allocation2 + $0x16c] ss:$16 sps:$4 sm:$0xff]   ;;  %v5029_v63 = vld [vmem:[#allocation2 + $0x1e8] ss:$16 sps:$4 sm:$0xff]  }
 0x152   :  { %v318_v60 = vadd.f32 %v5663_v22, %v317_v56  ;;  %v319_v61 = vpop.f32.mrb[31].mxu0  ;;  %v4990_v22 = vld [vmem:[#allocation2 + $0x120] ss:$16 sps:$4 sm:$0xff]   ;;  %2679 = vmatprep.subr.bf16.mxu0 %v4992_v2  ;;  %v5013_v56 = vld [vmem:[#allocation2 + $0x18c] ss:$16 sps:$4 sm:$0xff]  }
 0x153   :  { %v5031_v61 = vld [vmem:[#allocation2 + $0x1ec] ss:$16 sps:$4 sm:$0xff]  }
 0x154   :  { %v5779_v62 = vpack.c.bf16 %v318_v60, %v315_v59  ;;  %v5017_v59 = vld [vmem:[#allocation2 + $0x1a8] ss:$16 sps:$4 sm:$0xff]   ;;  %v5025_v60 = vld [vmem:[#allocation2 + $0x1cc] ss:$16 sps:$4 sm:$0xff]  }
 0x155   :  { %2680 = vmatpush1.bf16.msra.mxu0 %v4990_v22  ;;  %v5037_v1 = vld [vmem:[#allocation2 + $0x20c] ss:$16 sps:$4 sm:$0xff]   ;;  %v5865_v22 = vld [vmem:[%s6379_s4] sm:$0xff] }
 0x156   :  { %4211 = vmatmul.mubr.msk.bf16.gmra.mrb[20].mxu1 %vm199_vm0, %v5779_v62  ;;  %4225 = vmatmul.mubr.msk.bf16.gmra.mrb[60].mxu0 %vm199_vm0, %v5759_v38 }
 0x157   :  { %732 = vmatprep.mubr.bf16.mxu1 %v5404_v0  ;;  %905 = vmatprep.mubr.bf16.mxu0 %v5404_v0 }
 0x158   :  { %2681 = vmatprep.subr.bf16.mxu0 %v4998_v6 }
 0x159   :  { %2682 = vmatpush1.bf16.msra.mxu0 %v4996_v9 }
 0x15a   :  { %2683 = vmatprep.subr.bf16.mxu0 %v5004_v14 }
 0x15d   :  { %2684 = vmatpush1.bf16.msra.mxu0 %v5002_v15 }
 0x15e   :  { %4212 = vmatmul.mubr.msk.bf16.vlgmr.msra.gmra.mrb[24].mxu1 %vm199_vm0, %v5673_v31  ;;  %4226 = vmatmul.mubr.msk.bf16.gmra.mrb[64].mxu0 %vm199_vm0, %v5769_v50 }
 0x15f   :  { %742 = vmatprep.mubr.bf16.mxu1 %v5404_v0  ;;  %915 = vmatprep.mubr.bf16.mxu0 %v5404_v0 }
 0x160   :  { %927 = vmatpush1.bf16.msra.mxu1 %v4178_v5  ;;  %2685 = vmatprep.subr.bf16.mxu0 %v5010_v18  ;;  %v5040_v18 = vld [vmem:[#allocation2 + $0x224] ss:$16 sps:$4 sm:$0xff]  }
 0x161   :  { %928 = vmatprep.subr.bf16.mxu1 %v4187_v7  ;;  %2686 = vmatpush1.bf16.msra.mxu0 %v5008_v21 }
 0x162   :  { %2687 = vmatprep.subr.bf16.mxu0 %v5016_v23 }
 0x164   :  { %929 = vmatpush1.bf16.msra.mxu1 %v4186_v11 }
 0x165   :  { %930 = vmatprep.subr.bf16.mxu1 %v4195_v12  ;;  %2688 = vmatpush1.bf16.msra.mxu0 %v5014_v27 }
 0x166   :  { %4213 = vmatmul.mubr.msk.bf16.gmra.mrb[28].mxu1 %vm199_vm0, %v5692_v46  ;;  %4227 = vmatmul.mubr.msk.bf16.gmra.mrb[68].mxu0 %vm199_vm0, %v5779_v62 }
 0x167   :  { %752 = vmatprep.mubr.bf16.mxu1 %v5404_v0  ;;  %2689 = vmatprep.subr.bf16.mxu0 %v5022_v28 }
 0x168   :  { %931 = vmatpush1.bf16.msra.mxu1 %v4194_v19  ;;  %v5043_v19 = vld [vmem:[#allocation2 + $0x22c] ss:$16 sps:$4 sm:$0xff]  }
 0x169   :  { %932 = vmatprep.subr.bf16.mxu1 %v4203_v20  ;;  %2690 = vmatpush1.bf16.msra.mxu0 %v5020_v29 }
 0x16a   :  { %2691 = vmatprep.subr.bf16.mxu0 %v5028_v30 }
 0x16c   :  { %933 = vmatpush1.bf16.msra.mxu1 %v4202_v24  ;;  %v5038_v24 = vld [vmem:[#allocation2 + $0x220] ss:$16 sps:$4 sm:$0xff]  }
 0x16d   :  { %3113 = vmatprep.subr.bf16.mxu1 %v4941_v25  ;;  %2692 = vmatpush1.bf16.msra.mxu0 %v5026_v32  ;;  %v5041_v25 = vld [vmem:[#allocation2 + $0x228] ss:$16 sps:$4 sm:$0xff]   ;;  %v5046_v32 = vld [vmem:[#allocation2 + $0x244] ss:$16 sps:$4 sm:$0xff]  }
 0x16e   :  { %4214 = vmatmul.mubr.msk.bf16.gmra.mrb[32].mxu1 %vm199_vm0, %v5705_v57  ;;  %2774 = vmatprep.subr.bf16.mxu0 %v5034_v33  ;;  %v5049_v33 = vld [vmem:[#allocation2 + $0x24c] ss:$16 sps:$4 sm:$0xff]  }
 0x16f   :  { %762 = vmatprep.mubr.bf16.mxu1 %v5404_v0 }
 0x176   :  { %4215 = vmatmul.mubr.msk.bf16.gmra.mrb[36].mxu1 %vm199_vm0, %v5727_v8 }
 0x177   :  { %772 = vmatprep.mubr.bf16.mxu1 %v5404_v0 }
 0x17e   :  { %4216 = vmatmul.mubr.msk.bf16.gmra.mrb[40].mxu1 %vm199_vm0, %v5749_v26 }
 0x17f   :  { %782 = vmatprep.mubr.bf16.mxu1 %v5404_v0 }
 0x186   :  { %4217 = vmatmul.mubr.msk.bf16.gmra.mrb[44].mxu1 %vm199_vm0, %v5759_v38 }
 0x187   :  { %792 = vmatprep.mubr.bf16.mxu1 %v5404_v0 }
 0x18e   :  { %4218 = vmatmul.mubr.msk.bf16.gmra.mrb[48].mxu1 %vm199_vm0, %v5769_v50 }
 0x18f   :  { %802 = vmatprep.mubr.bf16.mxu1 %v5404_v0 }
 0x196   :  { %4219 = vmatmul.mubr.msk.bf16.gmra.mrb[52].mxu1 %vm199_vm0, %v5779_v62 }
 0x197   :  { %958 = vmatprep.mubr.bf16.mxu1 %v5404_v0 }
 0x19e   :  { %4228 = vmatmul.mubr.msk.bf16.vlgmr.msra.gmra.mrb[56].mxu1 %vm199_vm0, %v5673_v31  ;;  %v4963_v31 = vld [vmem:[#allocation2 + $0x88] ss:$16 sps:$4 sm:$0xff]  }
 0x19f   :  { %968 = vmatprep.mubr.bf16.mxu1 %v5404_v0  ;;  %3114 = vmatpush1.bf16.msra.mxu1 %v4939_v34 }
 0x1a0   :  { %3115 = vmatprep.subr.bf16.mxu1 %v4947_v35 }
 0x1a3   :  { %3116 = vmatpush1.bf16.msra.mxu1 %v4945_v36 }
 0x1a4   :  { %3117 = vmatprep.subr.bf16.mxu1 %v4953_v37 }
 0x1a6   :  { %4229 = vmatmul.mubr.msk.bf16.gmra.mrb[60].mxu1 %vm199_vm0, %v5692_v46  ;;  %v4975_v46 = vld [vmem:[#allocation2 + $0xc8] ss:$16 sps:$4 sm:$0xff]  }
 0x1a7   :  { %978 = vmatprep.mubr.bf16.mxu1 %v5404_v0  ;;  %3118 = vmatpush1.bf16.msra.mxu1 %v4951_v39 }
 0x1a8   :  { %3119 = vmatprep.subr.bf16.mxu1 %v4959_v40  ;;  %v5044_v40 = vld [vmem:[#allocation2 + $0x240] ss:$16 sps:$4 sm:$0xff]  }
 0x1ab   :  { %3120 = vmatpush1.bf16.msra.mxu1 %v4957_v41  ;;  %v5047_v41 = vld [vmem:[#allocation2 + $0x248] ss:$16 sps:$4 sm:$0xff]  }
 0x1ac   :  { %3121 = vmatprep.subr.bf16.mxu1 %v4965_v42 }
 0x1ae   :  { %4230 = vmatmul.mubr.msk.bf16.gmra.mrb[64].mxu1 %vm199_vm0, %v5705_v57  ;;  %v4987_v57 = vld [vmem:[#allocation2 + $0x108] ss:$16 sps:$4 sm:$0xff]  }
 0x1af   :  { %988 = vmatprep.mubr.bf16.mxu1 %v5404_v0  ;;  %3122 = vmatpush1.bf16.msra.mxu1 %v4963_v31  ;;  %v5052_v31 = vld [vmem:[#allocation2 + $0x264] ss:$16 sps:$4 sm:$0xff]  }
 0x1b0   :  { %3123 = vmatprep.subr.bf16.mxu1 %v4971_v43  ;;  %v5055_v43 = vld [vmem:[#allocation2 + $0x26c] ss:$16 sps:$4 sm:$0xff]  }
 0x1b3   :  { %3124 = vmatpush1.bf16.msra.mxu1 %v4969_v44 }
 0x1b4   :  { %3125 = vmatprep.subr.bf16.mxu1 %v4977_v45 }
 0x1b6   :  { %4231 = vmatmul.mubr.msk.bf16.gmra.mrb[68].mxu1 %vm199_vm0, %v5727_v8  ;;  %v4999_v8 = vld [vmem:[#allocation2 + $0x148] ss:$16 sps:$4 sm:$0xff]  }
 0x1b7   :  { %998 = vmatprep.mubr.bf16.mxu1 %v5404_v0  ;;  %3126 = vmatpush1.bf16.msra.mxu1 %v4975_v46 }
 0x1b8   :  { %3127 = vmatprep.subr.bf16.mxu1 %v4983_v47 }
 0x1bb   :  { %3128 = vmatpush1.bf16.msra.mxu1 %v4981_v48 }
 0x1bc   :  { %3129 = vmatprep.subr.bf16.mxu1 %v4989_v49 }
 0x1be   :  { %4232 = vmatmul.mubr.msk.bf16.gmra.mrb[72].mxu1 %vm199_vm0, %v5749_v26  ;;  %v5011_v26 = vld [vmem:[#allocation2 + $0x188] ss:$16 sps:$4 sm:$0xff]  }
 0x1bf   :  { %1008 = vmatprep.mubr.bf16.mxu1 %v5404_v0  ;;  %3130 = vmatpush1.bf16.msra.mxu1 %v4987_v57 }
 0x1c0   :  { %3131 = vmatprep.subr.bf16.mxu1 %v4995_v51 }
 0x1c3   :  { %3132 = vmatpush1.bf16.msra.mxu1 %v4993_v52  ;;  %v5050_v52 = vld [vmem:[#allocation2 + $0x260] ss:$16 sps:$4 sm:$0xff]  }
 0x1c4   :  { %3133 = vmatprep.subr.bf16.mxu1 %v5001_v53  ;;  %v5053_v53 = vld [vmem:[#allocation2 + $0x268] ss:$16 sps:$4 sm:$0xff]  }
 0x1c6   :  { %4233 = vmatmul.mubr.msk.bf16.gmra.mrb[76].mxu1 %vm199_vm0, %v5759_v38  ;;  %v5023_v38 = vld [vmem:[#allocation2 + $0x1c8] ss:$16 sps:$4 sm:$0xff]  }
 0x1c7   :  { %1018 = vmatprep.mubr.bf16.mxu1 %v5404_v0  ;;  %3134 = vmatpush1.bf16.msra.mxu1 %v4999_v8 }
 0x1c8   :  { %3135 = vmatprep.subr.bf16.mxu1 %v5007_v54 }
 0x1cb   :  { %3136 = vmatpush1.bf16.msra.mxu1 %v5005_v55 }
 0x1cc   :  { %3137 = vmatprep.subr.bf16.mxu1 %v5013_v56 }
 0x1ce   :  { %4234 = vmatmul.mubr.msk.bf16.gmra.mrb[80].mxu1 %vm199_vm0, %v5769_v50  ;;  %v363_v50 = vlaneseq }
 0x1cf   :  { %1028 = vmatprep.mubr.bf16.mxu1 %v5404_v0  ;;  %3138 = vmatpush1.bf16.msra.mxu1 %v5011_v26 }
 0x1d0   :  { %3139 = vmatprep.subr.bf16.mxu1 %v5019_v58  ;;  %v5859_v2 = vshrl.u32 %v363_v50, 7  ;;  %v5058_v58 = vld [vmem:[#allocation2 + $0x284] ss:$16 sps:$4 sm:$0xff]  }
 0x1d2   :  { %v365_v0 = vsub.s32 0, %v5859_v2  ;;  %v369_v3 = vsub.s32 1, %v5859_v2  ;;  %v381_v30 = vsub.s32 4, %v5859_v2  ;;  %v385_v36 = vsub.s32 5, %v5859_v2 }
 0x1d3   :  { %3140 = vmatpush1.bf16.msra.mxu1 %v5017_v59  ;;  %v5061_v59 = vld [vmem:[#allocation2 + $0x28c] ss:$16 sps:$4 sm:$0xff]  }
 0x1d4   :  { %3141 = vmatprep.subr.bf16.mxu1 %v5025_v60  ;;  %v5876_v5 = vrot.slane %v5865_v22, %v369_v3  ;;  %v5889_v42 = vrot.slane %v5865_v22, %v381_v30  ;;  %v5892_v46 = vrot.slane %v5865_v22, %v385_v36 }
 0x1d6   :  { %4235 = vmatmul.mubr.msk.bf16.gmra.mrb[84].mxu1 %vm199_vm0, %v5779_v62  ;;  %v5871_v62 = vrot.slane %v5865_v22, %v365_v0 }
 0x1d7   :  { %3142 = vmatpush1.bf16.msra.mxu1 %v5023_v38 }
 0x1d8   :  { %3143 = vmatprep.subr.bf16.mxu1 %v5031_v61 }
 0x1db   :  { %3144 = vmatpush1.bf16.msra.mxu1 %v5029_v63 }
 0x1dc   :  { %3226 = vmatprep.subr.bf16.mxu1 %v5037_v1 }
 0x1f1   :  { %v621_v4 = vpop.f32.mrb[32].mxu0 }
 0x1f2   :  { %v623_v6 = vpop.f32.mrb[33].mxu0  ;;  %v622_v9 = vadd.f32 %v621_v4, %v5871_v62 }
 0x1f3   :  { %v625_v7 = vpop.f32.mrb[34].mxu0  ;;  %v624_v14 = vadd.f32 %v623_v6, %v5876_v5 }
 0x1f4   :  { %v626_v10 = vadd.f32 %v625_v7, %v5871_v62  ;;  %v627_v13 = vpop.f32.mrb[35].mxu0  ;;  %v5056_v7 = vld [vmem:[#allocation2 + $0x280] ss:$16 sps:$4 sm:$0xff]  }
 0x1f5   :  { %v628_v11 = vadd.f32 %v627_v13, %v5876_v5  ;;  %v5067_v13 = vld [vmem:[#allocation2 + $0x2ac] ss:$16 sps:$4 sm:$0xff]  }
 0x1f6   :  { %v1039_v12 = vpack.c.bf16 %v626_v10, %v622_v9  ;;  %v5059_v9 = vld [vmem:[#allocation2 + $0x288] ss:$16 sps:$4 sm:$0xff]   ;;  %v5064_v10 = vld [vmem:[#allocation2 + $0x2a4] ss:$16 sps:$4 sm:$0xff]  }
 0x1f7   :  { %v1040_v15 = vpack.c.bf16 %v628_v11, %v624_v14 }
 0x1f9   :  { %v631_v20 = vpop.f32.mrb[36].mxu0  ;;  %2693 = vmatprep.mubr.bf16.mxu0 %v1040_v15  ;;  %3145 = vmatprep.mubr.bf16.mxu1 %v1040_v15 }
 0x1fa   :  { %v633_v21 = vpop.f32.mrb[37].mxu0  ;;  %2694 = vmatmul.mubr.bf16.vlgmr.msra.gmra.mrb[72].mxu0 %v1039_v12  ;;  %3146 = vmatmul.mubr.bf16.vlgmr.msra.gmra.mrb[88].mxu1 %v1039_v12  ;;  %v632_v27 = vadd.f32 %v631_v20, %v5871_v62  ;;  %v5065_v20 = vld [vmem:[#allocation2 + $0x2a8] ss:$16 sps:$4 sm:$0xff]  }
 0x1fb   :  { %2775 = vmatpush1.bf16.msra.mxu0 %v5032_v16  ;;  %v635_v23 = vpop.f32.mrb[38].mxu0  ;;  %3227 = vmatpush1.bf16.msra.mxu1 %v5035_v17  ;;  %v634_v34 = vadd.f32 %v633_v21, %v5876_v5 }
 0x1fc   :  { %v636_v28 = vadd.f32 %v635_v23, %v5871_v62  ;;  %v637_v29 = vpop.f32.mrb[39].mxu0  ;;  %2776 = vmatprep.subr.bf16.mxu0 %v5040_v18  ;;  %3228 = vmatprep.subr.bf16.mxu1 %v5043_v19  ;;  %v5062_v19 = vld [vmem:[#allocation2 + $0x2a0] ss:$16 sps:$4 sm:$0xff]  }
 0x1fd   :  { %v638_v35 = vadd.f32 %v637_v29, %v5876_v5  ;;  %v5073_v29 = vld [vmem:[#allocation2 + $0x2cc] ss:$16 sps:$4 sm:$0xff]  }
 0x1fe   :  { %v1047_v37 = vpack.c.bf16 %v636_v28, %v632_v27  ;;  %v5070_v28 = vld [vmem:[#allocation2 + $0x2c4] ss:$16 sps:$4 sm:$0xff]  }
 0x1ff   :  { %v1048_v39 = vpack.c.bf16 %v638_v35, %v634_v34  ;;  %2777 = vmatpush1.bf16.msra.mxu0 %v5038_v24  ;;  %3229 = vmatpush1.bf16.msra.mxu1 %v5041_v25 }
 0x200   :  { %2778 = vmatprep.subr.bf16.mxu0 %v5046_v32  ;;  %3230 = vmatprep.subr.bf16.mxu1 %v5049_v33 }
 0x201   :  { %v641_v44 = vpop.f32.mrb[0].mxu1  ;;  %v847_v45 = vpop.f32.mrb[40].mxu0  ;;  %2703 = vmatprep.mubr.bf16.mxu0 %v1048_v39  ;;  %3155 = vmatprep.mubr.bf16.mxu1 %v1048_v39 }
 0x202   :  { %v643_v47 = vpop.f32.mrb[1].mxu1  ;;  %v849_v48 = vpop.f32.mrb[41].mxu0  ;;  %2704 = vmatmul.mubr.bf16.gmra.mrb[76].mxu0 %v1047_v37  ;;  %3156 = vmatmul.mubr.bf16.gmra.mrb[92].mxu1 %v1047_v37  ;;  %v642_v49 = vadd.f32 %v641_v44, %v5871_v62  ;;  %v848_v8 = vadd.f32 %v847_v45, %v5889_v42 }
 0x203   :  { %2779 = vmatpush1.bf16.msra.mxu0 %v5044_v40  ;;  %v645_v57 = vpop.f32.mrb[2].mxu1  ;;  %v851_v51 = vpop.f32.mrb[42].mxu0  ;;  %3231 = vmatpush1.bf16.msra.mxu1 %v5047_v41  ;;  %v644_v60 = vadd.f32 %v643_v47, %v5876_v5  ;;  %v850_v38 = vadd.f32 %v849_v48, %v5892_v46  ;;  %v5068_v40 = vld [vmem:[#allocation2 + $0x2c0] ss:$16 sps:$4 sm:$0xff]   ;;  %v5071_v41 = vld [vmem:[#allocation2 + $0x2c8] ss:$16 sps:$4 sm:$0xff]  }
 0x204   :  { %v646_v54 = vadd.f32 %v645_v57, %v5871_v62  ;;  %v852_v55 = vadd.f32 %v851_v51, %v5889_v42  ;;  %v647_v56 = vpop.f32.mrb[3].mxu1  ;;  %v853_v26 = vpop.f32.mrb[43].mxu0  ;;  %2780 = vmatprep.subr.bf16.mxu0 %v5052_v31  ;;  %3232 = vmatprep.subr.bf16.mxu1 %v5055_v43  ;;  %v5076_v31 = vld [vmem:[#allocation2 + $0x2e4] ss:$16 sps:$4 sm:$0xff]   ;;  %v5079_v43 = vld [vmem:[#allocation2 + $0x2ec] ss:$16 sps:$4 sm:$0xff]  }
 0x205   :  { %v648_v61 = vadd.f32 %v647_v56, %v5876_v5  ;;  %v854_v63 = vadd.f32 %v853_v26, %v5892_v46 }
 0x206   :  { %v1055_v1 = vpack.c.bf16 %v646_v54, %v642_v49  ;;  %v5902_v50 = vpack.c.bf16 %v852_v55, %v848_v8 }
 0x207   :  { %v1056_v4 = vpack.c.bf16 %v648_v61, %v644_v60  ;;  %v5904_v6 = vpack.c.bf16 %v854_v63, %v850_v38  ;;  %2781 = vmatpush1.bf16.msra.mxu0 %v5050_v52  ;;  %3233 = vmatpush1.bf16.msra.mxu1 %v5053_v53  ;;  %v5074_v52 = vld [vmem:[#allocation2 + $0x2e0] ss:$16 sps:$4 sm:$0xff]   ;;  %v5077_v53 = vld [vmem:[#allocation2 + $0x2e8] ss:$16 sps:$4 sm:$0xff]  }
 0x208   :  { %2782 = vmatprep.subr.bf16.mxu0 %v5058_v58  ;;  %3234 = vmatprep.subr.bf16.mxu1 %v5061_v59  ;;  %v5082_v58 = vld [vmem:[#allocation2 + $0x304] ss:$16 sps:$4 sm:$0xff]   ;;  %v5085_v59 = vld [vmem:[#allocation2 + $0x30c] ss:$16 sps:$4 sm:$0xff]  }
 0x209   :  { %v651_v14 = vpop.f32.mrb[4].mxu1  ;;  %v857_v11 = vpop.f32.mrb[44].mxu0  ;;  %2713 = vmatprep.mubr.bf16.mxu0 %v1056_v4  ;;  %3165 = vmatprep.mubr.bf16.mxu1 %v1056_v4 }
 0x20a   :  { %v653_v12 = vpop.f32.mrb[5].mxu1  ;;  %v859_v15 = vpop.f32.mrb[45].mxu0  ;;  %2714 = vmatmul.mubr.bf16.gmra.mrb[80].mxu0 %v1055_v1  ;;  %3166 = vmatmul.mubr.bf16.gmra.mrb[96].mxu1 %v1055_v1  ;;  %v652_v16 = vadd.f32 %v651_v14, %v5871_v62  ;;  %v858_v21 = vadd.f32 %v857_v11, %v5889_v42  ;;  %v5088_v14 = vld [vmem:[#allocation2 + $0x324] ss:$16 sps:$4 sm:$0xff]   ;;  %v5091_v11 = vld [vmem:[#allocation2 + $0x32c] ss:$16 sps:$4 sm:$0xff]  }
 0x20b   :  { %2783 = vmatpush1.bf16.msra.mxu0 %v5056_v7  ;;  %v655_v17 = vpop.f32.mrb[6].mxu1  ;;  %v861_v18 = vpop.f32.mrb[46].mxu0  ;;  %3235 = vmatpush1.bf16.msra.mxu1 %v5059_v9  ;;  %v654_v30 = vadd.f32 %v653_v12, %v5876_v5  ;;  %v860_v32 = vadd.f32 %v859_v15, %v5892_v46 }
 0x20c   :  { %v656_v23 = vadd.f32 %v655_v17, %v5871_v62  ;;  %v862_v24 = vadd.f32 %v861_v18, %v5889_v42  ;;  %v657_v25 = vpop.f32.mrb[7].mxu1  ;;  %v863_v27 = vpop.f32.mrb[47].mxu0  ;;  %2784 = vmatprep.subr.bf16.mxu0 %v5064_v10  ;;  %3236 = vmatprep.subr.bf16.mxu1 %v5067_v13  ;;  %v5080_v10 = vld [vmem:[#allocation2 + $0x300] ss:$16 sps:$4 sm:$0xff]   ;;  %v5083_v13 = vld [vmem:[#allocation2 + $0x308] ss:$16 sps:$4 sm:$0xff]  }
 0x20d   :  { %v658_v33 = vadd.f32 %v657_v25, %v5876_v5  ;;  %v864_v34 = vadd.f32 %v863_v27, %v5892_v46 }
 0x20e   :  { %v1063_v35 = vpack.c.bf16 %v656_v23, %v652_v16  ;;  %v5914_v36 = vpack.c.bf16 %v862_v24, %v858_v21  ;;  %v5086_v21 = vld [vmem:[#allocation2 + $0x320] ss:$16 sps:$4 sm:$0xff]   ;;  %v5089_v23 = vld [vmem:[#allocation2 + $0x328] ss:$16 sps:$4 sm:$0xff]  }
 0x20f   :  { %v1064_v37 = vpack.c.bf16 %v658_v33, %v654_v30  ;;  %v5916_v39 = vpack.c.bf16 %v864_v34, %v860_v32  ;;  %2785 = vmatpush1.bf16.msra.mxu0 %v5062_v19  ;;  %3237 = vmatpush1.bf16.msra.mxu1 %v5065_v20  ;;  %v5094_v30 = vld [vmem:[#allocation2 + $0x344] ss:$16 sps:$4 sm:$0xff]   ;;  %v5097_v32 = vld [vmem:[#allocation2 + $0x34c] ss:$16 sps:$4 sm:$0xff]  }
 0x210   :  { %2786 = vmatprep.subr.bf16.mxu0 %v5070_v28  ;;  %3238 = vmatprep.subr.bf16.mxu1 %v5073_v29 }
 0x211   :  { %v661_v44 = vpop.f32.mrb[8].mxu1  ;;  %v867_v45 = vpop.f32.mrb[48].mxu0  ;;  %2723 = vmatprep.mubr.bf16.mxu0 %v1064_v37  ;;  %3175 = vmatprep.mubr.bf16.mxu1 %v1064_v37 }
 0x212   :  { %v663_v47 = vpop.f32.mrb[9].mxu1  ;;  %v869_v48 = vpop.f32.mrb[49].mxu0  ;;  %2724 = vmatmul.mubr.bf16.gmra.mrb[84].mxu0 %v1063_v35  ;;  %3176 = vmatmul.mubr.bf16.gmra.mrb[100].mxu1 %v1063_v35  ;;  %v662_v49 = vadd.f32 %v661_v44, %v5871_v62  ;;  %v868_v8 = vadd.f32 %v867_v45, %v5889_v42  ;;  %v5092_v44 = vld [vmem:[#allocation2 + $0x340] ss:$16 sps:$4 sm:$0xff]   ;;  %v5095_v45 = vld [vmem:[#allocation2 + $0x348] ss:$16 sps:$4 sm:$0xff]  }
 0x213   :  { %2787 = vmatpush1.bf16.msra.mxu0 %v5068_v40  ;;  %v665_v57 = vpop.f32.mrb[10].mxu1  ;;  %v871_v51 = vpop.f32.mrb[50].mxu0  ;;  %3239 = vmatpush1.bf16.msra.mxu1 %v5071_v41  ;;  %v664_v60 = vadd.f32 %v663_v47, %v5876_v5  ;;  %v870_v38 = vadd.f32 %v869_v48, %v5892_v46  ;;  %v5100_v47 = vld [vmem:[#allocation2 + $0x364] ss:$16 sps:$4 sm:$0xff]   ;;  %v5103_v48 = vld [vmem:[#allocation2 + $0x36c] ss:$16 sps:$4 sm:$0xff]  }
 0x214   :  { %v666_v54 = vadd.f32 %v665_v57, %v5871_v62  ;;  %v872_v55 = vadd.f32 %v871_v51, %v5889_v42  ;;  %v667_v56 = vpop.f32.mrb[11].mxu1  ;;  %v873_v26 = vpop.f32.mrb[51].mxu0  ;;  %2788 = vmatprep.subr.bf16.mxu0 %v5076_v31  ;;  %3240 = vmatprep.subr.bf16.mxu1 %v5079_v43 }
 0x215   :  { %v668_v61 = vadd.f32 %v667_v56, %v5876_v5  ;;  %v874_v63 = vadd.f32 %v873_v26, %v5892_v46  ;;  %v5101_v56 = vld [vmem:[#allocation2 + $0x368] ss:$16 sps:$4 sm:$0xff]  }
 0x216   :  { %v1071_v1 = vpack.c.bf16 %v666_v54, %v662_v49  ;;  %v5926_v4 = vpack.c.bf16 %v872_v55, %v868_v8  ;;  %v5098_v55 = vld [vmem:[#allocation2 + $0x360] ss:$16 sps:$4 sm:$0xff]  }
 0x217   :  { %v1072_v7 = vpack.c.bf16 %v668_v61, %v664_v60  ;;  %v5928_v9 = vpack.c.bf16 %v874_v63, %v870_v38  ;;  %2789 = vmatpush1.bf16.msra.mxu0 %v5074_v52  ;;  %3241 = vmatpush1.bf16.msra.mxu1 %v5077_v53  ;;  %v5106_v61 = vld [vmem:[#allocation2 + $0x384] ss:$16 sps:$4 sm:$0xff]   ;;  %v5109_v63 = vld [vmem:[#allocation2 + $0x38c] ss:$16 sps:$4 sm:$0xff]  }
 0x218   :  { %2790 = vmatprep.subr.bf16.mxu0 %v5082_v58  ;;  %3242 = vmatprep.subr.bf16.mxu1 %v5085_v59 }
 0x219   :  { %v671_v12 = vpop.f32.mrb[12].mxu1  ;;  %v877_v15 = vpop.f32.mrb[52].mxu0  ;;  %2733 = vmatprep.mubr.bf16.mxu0 %v1072_v7  ;;  %3185 = vmatprep.mubr.bf16.mxu1 %v1072_v7 }
 0x21a   :  { %v673_v16 = vpop.f32.mrb[13].mxu1  ;;  %v879_v17 = vpop.f32.mrb[53].mxu0  ;;  %2734 = vmatmul.mubr.bf16.gmra.mrb[88].mxu0 %v1071_v1  ;;  %3186 = vmatmul.mubr.bf16.gmra.mrb[104].mxu1 %v1071_v1  ;;  %v672_v18 = vadd.f32 %v671_v12, %v5871_v62  ;;  %v878_v24 = vadd.f32 %v877_v15, %v5889_v42 }
 0x21b   :  { %2791 = vmatpush1.bf16.msra.mxu0 %v5080_v10  ;;  %v675_v19 = vpop.f32.mrb[14].mxu1  ;;  %v881_v20 = vpop.f32.mrb[54].mxu0  ;;  %3243 = vmatpush1.bf16.msra.mxu1 %v5083_v13  ;;  %v674_v33 = vadd.f32 %v673_v16, %v5876_v5  ;;  %v880_v34 = vadd.f32 %v879_v17, %v5892_v46  ;;  %v5104_v16 = vld [vmem:[#allocation2 + $0x380] ss:$16 sps:$4 sm:$0xff]   ;;  %v5107_v17 = vld [vmem:[#allocation2 + $0x388] ss:$16 sps:$4 sm:$0xff]  }
 0x21c   :  { %v676_v25 = vadd.f32 %v675_v19, %v5871_v62  ;;  %v882_v27 = vadd.f32 %v881_v20, %v5889_v42  ;;  %v677_v28 = vpop.f32.mrb[15].mxu1  ;;  %v883_v29 = vpop.f32.mrb[55].mxu0  ;;  %2792 = vmatprep.subr.bf16.mxu0 %v5088_v14  ;;  %3244 = vmatprep.subr.bf16.mxu1 %v5091_v11  ;;  %v5115_v19 = vld [vmem:[#allocation2 + $0x3ac] ss:$16 sps:$4 sm:$0xff]  }
 0x21d   :  { %v678_v35 = vadd.f32 %v677_v28, %v5876_v5  ;;  %v884_v37 = vadd.f32 %v883_v29, %v5892_v46 }
 0x21e   :  { %v1079_v40 = vpack.c.bf16 %v676_v25, %v672_v18  ;;  %v5938_v41 = vpack.c.bf16 %v882_v27, %v878_v24  ;;  %v5112_v18 = vld [vmem:[#allocation2 + $0x3a4] ss:$16 sps:$4 sm:$0xff]   ;;  %v5110_v25 = vld [vmem:[#allocation2 + $0x3a0] ss:$16 sps:$4 sm:$0xff]  }
 0x21f   :  { %v1080_v31 = vpack.c.bf16 %v678_v35, %v674_v33  ;;  %v5940_v43 = vpack.c.bf16 %v884_v37, %v880_v34  ;;  %2793 = vmatpush1.bf16.msra.mxu0 %v5086_v21  ;;  %3245 = vmatpush1.bf16.msra.mxu1 %v5089_v23  ;;  %v377_v33 = vsub.s32 3, %v5859_v2 }
 0x220   :  { %2794 = vmatprep.subr.bf16.mxu0 %v5094_v30  ;;  %3246 = vmatprep.subr.bf16.mxu1 %v5097_v32  ;;  %v5113_v30 = vld [vmem:[#allocation2 + $0x3a8] ss:$16 sps:$4 sm:$0xff]   ;;  %v373_v32 = vsub.s32 2, %v5859_v2 }
 0x221   :  { %v681_v49 = vpop.f32.mrb[16].mxu1  ;;  %v887_v57 = vpop.f32.mrb[56].mxu0  ;;  %2743 = vmatprep.mubr.bf16.mxu0 %v1080_v31  ;;  %3195 = vmatprep.mubr.bf16.mxu1 %v1080_v31 }
 0x222   :  { %v683_v51 = vpop.f32.mrb[17].mxu1  ;;  %v889_v52 = vpop.f32.mrb[57].mxu0  ;;  %2744 = vmatmul.mubr.bf16.gmra.mrb[92].mxu0 %v1079_v40  ;;  %3196 = vmatmul.mubr.bf16.gmra.mrb[108].mxu1 %v1079_v40  ;;  %v682_v53 = vadd.f32 %v681_v49, %v5871_v62  ;;  %v888_v26 = vadd.f32 %v887_v57, %v5889_v42 }
 0x223   :  { %2795 = vmatpush1.bf16.msra.mxu0 %v5092_v44  ;;  %v685_v8 = vpop.f32.mrb[18].mxu1  ;;  %v891_v54 = vpop.f32.mrb[58].mxu0  ;;  %3247 = vmatpush1.bf16.msra.mxu1 %v5095_v45  ;;  %v684_v1 = vadd.f32 %v683_v51, %v5876_v5  ;;  %v890_v7 = vadd.f32 %v889_v52, %v5892_v46  ;;  %v5118_v44 = vld [vmem:[#allocation2 + $0x3c4] ss:$16 sps:$4 sm:$0xff]   ;;  %v5121_v45 = vld [vmem:[#allocation2 + $0x3cc] ss:$16 sps:$4 sm:$0xff]  }
 0x224   :  { %v686_v58 = vadd.f32 %v685_v8, %v5871_v62  ;;  %v892_v59 = vadd.f32 %v891_v54, %v5889_v42  ;;  %v687_v60 = vpop.f32.mrb[19].mxu1  ;;  %v893_v38 = vpop.f32.mrb[59].mxu0  ;;  %2796 = vmatprep.subr.bf16.mxu0 %v5100_v47  ;;  %3248 = vmatprep.subr.bf16.mxu1 %v5103_v48  ;;  %v5971_v8 = vrot.slane %v5865_v22, %v373_v32  ;;  %v5116_v54 = vld [vmem:[#allocation2 + $0x3c0] ss:$16 sps:$4 sm:$0xff]  }
 0x225   :  { %v688_v10 = vadd.f32 %v687_v60, %v5876_v5  ;;  %v894_v13 = vadd.f32 %v893_v38, %v5892_v46 }
 0x226   :  { %v1087_v14 = vpack.c.bf16 %v686_v58, %v682_v53  ;;  %v5950_v11 = vpack.c.bf16 %v892_v59, %v888_v26  ;;  %v5976_v59 = vrot.slane %v5865_v22, %v377_v33 }
 0x227   :  { %v1088_v12 = vpack.c.bf16 %v688_v10, %v684_v1  ;;  %v5952_v15 = vpack.c.bf16 %v894_v13, %v890_v7  ;;  %2797 = vmatpush1.bf16.msra.mxu0 %v5098_v55  ;;  %3249 = vmatpush1.bf16.msra.mxu1 %v5101_v56  ;;  %v5119_v55 = vld [vmem:[#allocation2 + $0x3c8] ss:$16 sps:$4 sm:$0xff]   ;;  %v5127_v56 = vld [vmem:[#allocation2 + $0x3ec] ss:$16 sps:$4 sm:$0xff]   ;;  %v5122_v7 = vld [vmem:[#allocation2 + $0x3e0] ss:$16 sps:$4 sm:$0xff]  }
 0x228   :  { %2798 = vmatprep.subr.bf16.mxu0 %v5106_v61  ;;  %3250 = vmatprep.subr.bf16.mxu1 %v5109_v63  ;;  %v5125_v10 = vld [vmem:[#allocation2 + $0x3e8] ss:$16 sps:$4 sm:$0xff]  }
 0x229   :  { %v691_v20 = vpop.f32.mrb[20].mxu1  ;;  %v897_v21 = vpop.f32.mrb[60].mxu0  ;;  %2753 = vmatprep.mubr.bf16.mxu0 %v1088_v12  ;;  %3205 = vmatprep.mubr.bf16.mxu1 %v1088_v12 }
 0x22a   :  { %v693_v23 = vpop.f32.mrb[21].mxu1  ;;  %v899_v24 = vpop.f32.mrb[61].mxu0  ;;  %2754 = vmatmul.mubr.bf16.gmra.mrb[96].mxu0 %v1087_v14  ;;  %3206 = vmatmul.mubr.bf16.gmra.mrb[112].mxu1 %v1087_v14  ;;  %v692_v27 = vadd.f32 %v691_v20, %v5871_v62  ;;  %v898_v34 = vadd.f32 %v897_v21, %v5889_v42 }
 0x22b   :  { %2799 = vmatpush1.bf16.msra.mxu0 %v5104_v16  ;;  %v695_v28 = vpop.f32.mrb[22].mxu1  ;;  %v901_v29 = vpop.f32.mrb[62].mxu0  ;;  %3251 = vmatpush1.bf16.msra.mxu1 %v5107_v17  ;;  %v694_v47 = vadd.f32 %v693_v23, %v5876_v5  ;;  %v900_v48 = vadd.f32 %v899_v24, %v5892_v46  ;;  %v5130_v17 = vld [vmem:[#allocation2 + $0x404] ss:$16 sps:$4 sm:$0xff]  }
 0x22c   :  { %v696_v35 = vadd.f32 %v695_v28, %v5871_v62  ;;  %v902_v37 = vadd.f32 %v901_v29, %v5889_v42  ;;  %v697_v40 = vpop.f32.mrb[23].mxu1  ;;  %v903_v31 = vpop.f32.mrb[63].mxu0  ;;  %2800 = vmatprep.subr.bf16.mxu0 %v5112_v18  ;;  %3252 = vmatprep.subr.bf16.mxu1 %v5115_v19  ;;  %v5133_v18 = vld [vmem:[#allocation2 + $0x40c] ss:$16 sps:$4 sm:$0xff]   ;;  %v5128_v29 = vld [vmem:[#allocation2 + $0x400] ss:$16 sps:$4 sm:$0xff]  }
 0x22d   :  { %v698_v49 = vadd.f32 %v697_v40, %v5876_v5  ;;  %v904_v57 = vadd.f32 %v903_v31, %v5892_v46  ;;  %v5124_v5 = vld [vmem:[#allocation2 + $0x3e4] ss:$16 sps:$4 sm:$0xff]  }
 0x22e   :  { %v1095_v51 = vpack.c.bf16 %v696_v35, %v692_v27  ;;  %v5964_v52 = vpack.c.bf16 %v902_v37, %v898_v34  ;;  %v5136_v34 = vld [vmem:[#allocation2 + $0x424] ss:$16 sps:$4 sm:$0xff]   ;;  %v5139_v35 = vld [vmem:[#allocation2 + $0x42c] ss:$16 sps:$4 sm:$0xff]  }
 0x22f   :  { %v1096_v62 = vpack.c.bf16 %v698_v49, %v694_v47  ;;  %v5966_v53 = vpack.c.bf16 %v904_v57, %v900_v48  ;;  %2801 = vmatpush1.bf16.msra.mxu0 %v5110_v25  ;;  %3253 = vmatpush1.bf16.msra.mxu1 %v5113_v30  ;;  %v5131_v30 = vld [vmem:[#allocation2 + $0x408] ss:$16 sps:$4 sm:$0xff]   ;;  %v5134_v49 = vld [vmem:[#allocation2 + $0x420] ss:$16 sps:$4 sm:$0xff]  }
 0x230   :  { %2802 = vmatprep.subr.bf16.mxu0 %v5118_v44  ;;  %3254 = vmatprep.subr.bf16.mxu1 %v5121_v45  ;;  %v5137_v57 = vld [vmem:[#allocation2 + $0x428] ss:$16 sps:$4 sm:$0xff]  }
 0x231   :  { %v734_v26 = vpop.f32.mrb[24].mxu1  ;;  %v907_v58 = vpop.f32.mrb[64].mxu0  ;;  %2763 = vmatprep.mubr.bf16.mxu0 %v1096_v62  ;;  %3215 = vmatprep.mubr.bf16.mxu1 %v1096_v62 }
 0x232   :  { %v736_v60 = vpop.f32.mrb[25].mxu1  ;;  %v909_v38 = vpop.f32.mrb[65].mxu0  ;;  %2764 = vmatmul.mubr.bf16.gmra.mrb[100].mxu0 %v1095_v51  ;;  %3216 = vmatmul.mubr.bf16.gmra.mrb[116].mxu1 %v1095_v51  ;;  %v735_v61 = vadd.f32 %v734_v26, %v5971_v8  ;;  %v908_v13 = vadd.f32 %v907_v58, %v5889_v42  ;;  %v5145_v26 = vld [vmem:[#allocation2 + $0x44c] ss:$16 sps:$4 sm:$0xff]  }
 0x233   :  { %2803 = vmatpush1.bf16.msra.mxu0 %v5116_v54  ;;  %v738_v63 = vpop.f32.mrb[26].mxu1  ;;  %v911_v1 = vpop.f32.mrb[66].mxu0  ;;  %3255 = vmatpush1.bf16.msra.mxu1 %v5119_v55  ;;  %v737_v19 = vadd.f32 %v736_v60, %v5976_v59  ;;  %v910_v20 = vadd.f32 %v909_v38, %v5892_v46 }
 0x234   :  { %v739_v14 = vadd.f32 %v738_v63, %v5971_v8  ;;  %v912_v12 = vadd.f32 %v911_v1, %v5889_v42  ;;  %v740_v22 = vpop.f32.mrb[27].mxu1  ;;  %v913_v16 = vpop.f32.mrb[67].mxu0  ;;  %2804 = vmatprep.subr.bf16.mxu0 %v5124_v5  ;;  %3256 = vmatprep.subr.bf16.mxu1 %v5127_v56  ;;  %v5142_v56 = vld [vmem:[#allocation2 + $0x444] ss:$16 sps:$4 sm:$0xff]  }
 0x235   :  { %v741_v21 = vadd.f32 %v740_v22, %v5976_v59  ;;  %v914_v23 = vadd.f32 %v913_v16, %v5892_v46 }
 0x236   :  { %v1041_v24 = vpack.c.bf16 %v739_v14, %v735_v61  ;;  %v5986_v25 = vpack.c.bf16 %v912_v12, %v908_v13  ;;  %v5143_v13 = vld [vmem:[#allocation2 + $0x448] ss:$16 sps:$4 sm:$0xff]   ;;  %v5148_v14 = vld [vmem:[#allocation2 + $0x464] ss:$16 sps:$4 sm:$0xff]   ;;  %v5151_v12 = vld [vmem:[#allocation2 + $0x46c] ss:$16 sps:$4 sm:$0xff]  }
 0x237   :  { %v1042_v27 = vpack.c.bf16 %v741_v21, %v737_v19  ;;  %v5988_v28 = vpack.c.bf16 %v914_v23, %v910_v20  ;;  %2805 = vmatpush1.bf16.msra.mxu0 %v5122_v7  ;;  %3257 = vmatpush1.bf16.msra.mxu1 %v5125_v10  ;;  %v5154_v23 = vld [vmem:[#allocation2 + $0x484] ss:$16 sps:$4 sm:$0xff]  }
 0x238   :  { %2887 = vmatprep.subr.bf16.mxu0 %v5130_v17  ;;  %3339 = vmatprep.subr.bf16.mxu1 %v5133_v18  ;;  %v5146_v17 = vld [vmem:[#allocation2 + $0x460] ss:$16 sps:$4 sm:$0xff]   ;;  %v5149_v18 = vld [vmem:[#allocation2 + $0x468] ss:$16 sps:$4 sm:$0xff]  }
 0x239   :  { %v744_v37 = vpop.f32.mrb[28].mxu1  ;;  %v917_v40 = vpop.f32.mrb[68].mxu0  ;;  %2806 = vmatprep.mubr.bf16.mxu0 %v1042_v27  ;;  %3258 = vmatprep.mubr.bf16.mxu1 %v1042_v27 }
 0x23a   :  { %v746_v31 = vpop.f32.mrb[29].mxu1  ;;  %v919_v44 = vpop.f32.mrb[69].mxu0  ;;  %2807 = vmatmul.mubr.bf16.vlgmr.msra.gmra.mrb[72].mxu0 %v1041_v24  ;;  %3259 = vmatmul.mubr.bf16.vlgmr.msra.gmra.mrb[88].mxu1 %v1041_v24  ;;  %v745_v45 = vadd.f32 %v744_v37, %v5971_v8  ;;  %v918_v51 = vadd.f32 %v917_v40, %v5889_v42  ;;  %v5157_v24 = vld [vmem:[#allocation2 + $0x48c] ss:$16 sps:$4 sm:$0xff]   ;;  %v5155_v37 = vld [vmem:[#allocation2 + $0x488] ss:$16 sps:$4 sm:$0xff]  }
 0x23b   :  { %2888 = vmatpush1.bf16.msra.mxu0 %v5128_v29  ;;  %v748_v47 = vpop.f32.mrb[30].mxu1  ;;  %v921_v48 = vpop.f32.mrb[70].mxu0  ;;  %3340 = vmatpush1.bf16.msra.mxu1 %v5131_v30  ;;  %v747_v58 = vadd.f32 %v746_v31, %v5976_v59  ;;  %v920_v60 = vadd.f32 %v919_v44, %v5892_v46  ;;  %v5160_v40 = vld [vmem:[#allocation2 + $0x4a4] ss:$16 sps:$4 sm:$0xff]   ;;  %v5163_v31 = vld [vmem:[#allocation2 + $0x4ac] ss:$16 sps:$4 sm:$0xff]  }
 0x23c   :  { %v749_v62 = vadd.f32 %v748_v47, %v5971_v8  ;;  %v922_v54 = vadd.f32 %v921_v48, %v5889_v42  ;;  %v750_v55 = vpop.f32.mrb[31].mxu1  ;;  %v923_v5 = vpop.f32.mrb[71].mxu0  ;;  %2889 = vmatprep.subr.bf16.mxu0 %v5136_v34  ;;  %3341 = vmatprep.subr.bf16.mxu1 %v5139_v35  ;;  %v5140_v42 = vld [vmem:[#allocation2 + $0x440] ss:$16 sps:$4 sm:$0xff]  }
 0x23d   :  { %v751_v38 = vadd.f32 %v750_v55, %v5976_v59  ;;  %v924_v61 = vadd.f32 %v923_v5, %v5892_v46  ;;  %v5152_v35 = vld [vmem:[#allocation2 + $0x480] ss:$16 sps:$4 sm:$0xff]   ;;  %v5169_v55 = vld [vmem:[#allocation2 + $0x4cc] ss:$16 sps:$4 sm:$0xff]  }
 0x23e   :  { %v1049_v63 = vpack.c.bf16 %v749_v62, %v745_v45  ;;  %v5998_v1 = vpack.c.bf16 %v922_v54, %v918_v51  ;;  %v5158_v48 = vld [vmem:[#allocation2 + $0x4a0] ss:$16 sps:$4 sm:$0xff]   ;;  %v5166_v54 = vld [vmem:[#allocation2 + $0x4c4] ss:$16 sps:$4 sm:$0xff]  }
 0x23f   :  { %v1050_v7 = vpack.c.bf16 %v751_v38, %v747_v58  ;;  %v6000_v10 = vpack.c.bf16 %v924_v61, %v920_v60  ;;  %2890 = vmatpush1.bf16.msra.mxu0 %v5134_v49  ;;  %3342 = vmatpush1.bf16.msra.mxu1 %v5137_v57  ;;  %v5161_v49 = vld [vmem:[#allocation2 + $0x4a8] ss:$16 sps:$4 sm:$0xff]   ;;  %v5164_v60 = vld [vmem:[#allocation2 + $0x4c0] ss:$16 sps:$4 sm:$0xff]   ;;  %v5172_v61 = vld [vmem:[#allocation2 + $0x4e4] ss:$16 sps:$4 sm:$0xff]  }
 0x240   :  { %2891 = vmatprep.subr.bf16.mxu0 %v5142_v56  ;;  %3343 = vmatprep.subr.bf16.mxu1 %v5145_v26  ;;  %v5167_v38 = vld [vmem:[#allocation2 + $0x4c8] ss:$16 sps:$4 sm:$0xff]  }
 0x241   :  { %v754_v22 = vpop.f32.mrb[32].mxu1  ;;  %2816 = vmatprep.mubr.bf16.mxu0 %v1050_v7  ;;  %3268 = vmatprep.mubr.bf16.mxu1 %v1050_v7 }
 0x242   :  { %v756_v16 = vpop.f32.mrb[33].mxu1  ;;  %2817 = vmatmul.mubr.bf16.gmra.mrb[76].mxu0 %v1049_v63  ;;  %3269 = vmatmul.mubr.bf16.gmra.mrb[92].mxu1 %v1049_v63  ;;  %v755_v19 = vadd.f32 %v754_v22, %v5971_v8  ;;  %v5175_v63 = vld [vmem:[#allocation2 + $0x4ec] ss:$16 sps:$4 sm:$0xff]  }
 0x243   :  { %2892 = vmatpush1.bf16.msra.mxu0 %v5140_v42  ;;  %v758_v46 = vpop.f32.mrb[34].mxu1  ;;  %3344 = vmatpush1.bf16.msra.mxu1 %v5143_v13  ;;  %v757_v27 = vadd.f32 %v756_v16, %v5976_v59 }
 0x244   :  { %v759_v20 = vadd.f32 %v758_v46, %v5971_v8  ;;  %v760_v21 = vpop.f32.mrb[35].mxu1  ;;  %2893 = vmatprep.subr.bf16.mxu0 %v5148_v14  ;;  %3345 = vmatprep.subr.bf16.mxu1 %v5151_v12  ;;  %v5170_v14 = vld [vmem:[#allocation2 + $0x4e0] ss:$16 sps:$4 sm:$0xff]   ;;  %v5173_v12 = vld [vmem:[#allocation2 + $0x4e8] ss:$16 sps:$4 sm:$0xff]  }
 0x245   :  { %v761_v29 = vadd.f32 %v760_v21, %v5976_v59 }
 0x246   :  { %v1057_v30 = vpack.c.bf16 %v759_v20, %v755_v19 }
 0x247   :  { %v1058_v34 = vpack.c.bf16 %v761_v29, %v757_v27  ;;  %2894 = vmatpush1.bf16.msra.mxu0 %v5146_v17  ;;  %3346 = vmatpush1.bf16.msra.mxu1 %v5149_v18  ;;  %v5178_v17 = vld [vmem:[#allocation2 + $0x504] ss:$16 sps:$4 sm:$0xff]   ;;  %v5181_v18 = vld [vmem:[#allocation2 + $0x50c] ss:$16 sps:$4 sm:$0xff]   ;;  %v5179_v27 = vld [vmem:[#allocation2 + $0x508] ss:$16 sps:$4 sm:$0xff]  }
 0x248   :  { %2895 = vmatprep.subr.bf16.mxu0 %v5154_v23  ;;  %3347 = vmatprep.subr.bf16.mxu1 %v5157_v24  ;;  %v5176_v24 = vld [vmem:[#allocation2 + $0x500] ss:$16 sps:$4 sm:$0xff]   ;;  %v5184_v29 = vld [vmem:[#allocation2 + $0x524] ss:$16 sps:$4 sm:$0xff]  }
 0x249   :  { %v764_v44 = vpop.f32.mrb[36].mxu1  ;;  %2826 = vmatprep.mubr.bf16.mxu0 %v1058_v34  ;;  %3278 = vmatprep.mubr.bf16.mxu1 %v1058_v34 }
 0x24a   :  { %v766_v45 = vpop.f32.mrb[37].mxu1  ;;  %2827 = vmatmul.mubr.bf16.gmra.mrb[80].mxu0 %v1057_v30  ;;  %3279 = vmatmul.mubr.bf16.gmra.mrb[96].mxu1 %v1057_v30  ;;  %v765_v57 = vadd.f32 %v764_v44, %v5971_v8  ;;  %v5187_v30 = vld [vmem:[#allocation2 + $0x52c] ss:$16 sps:$4 sm:$0xff]  }
 0x24b   :  { %2896 = vmatpush1.bf16.msra.mxu0 %v5152_v35  ;;  %v768_v47 = vpop.f32.mrb[38].mxu1  ;;  %3348 = vmatpush1.bf16.msra.mxu1 %v5155_v37  ;;  %v767_v5 = vadd.f32 %v766_v45, %v5976_v59 }
 0x24c   :  { %v769_v51 = vadd.f32 %v768_v47, %v5971_v8  ;;  %v770_v62 = vpop.f32.mrb[39].mxu1  ;;  %2897 = vmatprep.subr.bf16.mxu0 %v5160_v40  ;;  %3349 = vmatprep.subr.bf16.mxu1 %v5163_v31  ;;  %v5182_v40 = vld [vmem:[#allocation2 + $0x520] ss:$16 sps:$4 sm:$0xff]   ;;  %v5185_v31 = vld [vmem:[#allocation2 + $0x528] ss:$16 sps:$4 sm:$0xff]  }
 0x24d   :  { %v771_v56 = vadd.f32 %v770_v62, %v5976_v59 }
 0x24e   :  { %v1065_v26 = vpack.c.bf16 %v769_v51, %v765_v57 }
 0x24f   :  { %v1066_v58 = vpack.c.bf16 %v771_v56, %v767_v5  ;;  %2898 = vmatpush1.bf16.msra.mxu0 %v5158_v48  ;;  %3350 = vmatpush1.bf16.msra.mxu1 %v5161_v49  ;;  %v5190_v48 = vld [vmem:[#allocation2 + $0x544] ss:$16 sps:$4 sm:$0xff]   ;;  %v5193_v49 = vld [vmem:[#allocation2 + $0x54c] ss:$16 sps:$4 sm:$0xff]   ;;  %v5191_v5 = vld [vmem:[#allocation2 + $0x548] ss:$16 sps:$4 sm:$0xff]  }
 0x250   :  { %2899 = vmatprep.subr.bf16.mxu0 %v5166_v54  ;;  %3351 = vmatprep.subr.bf16.mxu1 %v5169_v55  ;;  %v5188_v55 = vld [vmem:[#allocation2 + $0x540] ss:$16 sps:$4 sm:$0xff]   ;;  %v5196_v56 = vld [vmem:[#allocation2 + $0x564] ss:$16 sps:$4 sm:$0xff]  }
 0x251   :  { %v774_v7 = vpop.f32.mrb[40].mxu1  ;;  %2836 = vmatprep.mubr.bf16.mxu0 %v1066_v58  ;;  %3288 = vmatprep.mubr.bf16.mxu1 %v1066_v58 }
 0x252   :  { %v776_v42 = vpop.f32.mrb[41].mxu1  ;;  %2837 = vmatmul.mubr.bf16.gmra.mrb[84].mxu0 %v1065_v26  ;;  %3289 = vmatmul.mubr.bf16.gmra.mrb[100].mxu1 %v1065_v26  ;;  %v775_v22 = vadd.f32 %v774_v7, %v5971_v8  ;;  %v5199_v26 = vld [vmem:[#allocation2 + $0x56c] ss:$16 sps:$4 sm:$0xff]  }
 0x253   :  { %2900 = vmatpush1.bf16.msra.mxu0 %v5164_v60  ;;  %v778_v13 = vpop.f32.mrb[42].mxu1  ;;  %3352 = vmatpush1.bf16.msra.mxu1 %v5167_v38  ;;  %v777_v19 = vadd.f32 %v776_v42, %v5976_v59 }
 0x254   :  { %v779_v16 = vadd.f32 %v778_v13, %v5971_v8  ;;  %v780_v46 = vpop.f32.mrb[43].mxu1  ;;  %2901 = vmatprep.subr.bf16.mxu0 %v5172_v61  ;;  %3353 = vmatprep.subr.bf16.mxu1 %v5175_v63  ;;  %v5194_v61 = vld [vmem:[#allocation2 + $0x560] ss:$16 sps:$4 sm:$0xff]   ;;  %v5197_v63 = vld [vmem:[#allocation2 + $0x568] ss:$16 sps:$4 sm:$0xff]  }
 0x255   :  { %v781_v20 = vadd.f32 %v780_v46, %v5976_v59 }
 0x256   :  { %v1073_v21 = vpack.c.bf16 %v779_v16, %v775_v22 }
 0x257   :  { %v1074_v23 = vpack.c.bf16 %v781_v20, %v777_v19  ;;  %2902 = vmatpush1.bf16.msra.mxu0 %v5170_v14  ;;  %3354 = vmatpush1.bf16.msra.mxu1 %v5173_v12  ;;  %v5202_v14 = vld [vmem:[#allocation2 + $0x584] ss:$16 sps:$4 sm:$0xff]   ;;  %v5205_v12 = vld [vmem:[#allocation2 + $0x58c] ss:$16 sps:$4 sm:$0xff]   ;;  %v5203_v19 = vld [vmem:[#allocation2 + $0x588] ss:$16 sps:$4 sm:$0xff]  }
 0x258   :  { %2903 = vmatprep.subr.bf16.mxu0 %v5178_v17  ;;  %3355 = vmatprep.subr.bf16.mxu1 %v5181_v18  ;;  %v5200_v18 = vld [vmem:[#allocation2 + $0x580] ss:$16 sps:$4 sm:$0xff]   ;;  %v5208_v20 = vld [vmem:[#allocation2 + $0x5a4] ss:$16 sps:$4 sm:$0xff]  }
 0x259   :  { %v784_v34 = vpop.f32.mrb[44].mxu1  ;;  %2846 = vmatprep.mubr.bf16.mxu0 %v1074_v23  ;;  %3298 = vmatprep.mubr.bf16.mxu1 %v1074_v23 }
 0x25a   :  { %v786_v35 = vpop.f32.mrb[45].mxu1  ;;  %2847 = vmatmul.mubr.bf16.gmra.mrb[88].mxu0 %v1073_v21  ;;  %3299 = vmatmul.mubr.bf16.gmra.mrb[104].mxu1 %v1073_v21  ;;  %v785_v44 = vadd.f32 %v784_v34, %v5971_v8  ;;  %v5211_v21 = vld [vmem:[#allocation2 + $0x5ac] ss:$16 sps:$4 sm:$0xff]  }
 0x25b   :  { %2904 = vmatpush1.bf16.msra.mxu0 %v5176_v24  ;;  %v788_v37 = vpop.f32.mrb[46].mxu1  ;;  %3356 = vmatpush1.bf16.msra.mxu1 %v5179_v27  ;;  %v787_v57 = vadd.f32 %v786_v35, %v5976_v59 }
 0x25c   :  { %v789_v45 = vadd.f32 %v788_v37, %v5971_v8  ;;  %v790_v47 = vpop.f32.mrb[47].mxu1  ;;  %2905 = vmatprep.subr.bf16.mxu0 %v5184_v29  ;;  %3357 = vmatprep.subr.bf16.mxu1 %v5187_v30  ;;  %v5206_v29 = vld [vmem:[#allocation2 + $0x5a0] ss:$16 sps:$4 sm:$0xff]   ;;  %v5209_v30 = vld [vmem:[#allocation2 + $0x5a8] ss:$16 sps:$4 sm:$0xff]  }
 0x25d   :  { %v791_v51 = vadd.f32 %v790_v47, %v5976_v59 }
 0x25e   :  { %v1081_v62 = vpack.c.bf16 %v789_v45, %v785_v44  ;;  %v5217_v44 = vld [vmem:[#allocation2 + $0x5cc] ss:$16 sps:$4 sm:$0xff]  }
 0x25f   :  { %v1082_v54 = vpack.c.bf16 %v791_v51, %v787_v57  ;;  %2906 = vmatpush1.bf16.msra.mxu0 %v5182_v40  ;;  %3358 = vmatpush1.bf16.msra.mxu1 %v5185_v31  ;;  %v389_v40 = vsub.s32 6, %v5859_v2  ;;  %v5214_v31 = vld [vmem:[#allocation2 + $0x5c4] ss:$16 sps:$4 sm:$0xff]   ;;  %v5212_v51 = vld [vmem:[#allocation2 + $0x5c0] ss:$16 sps:$4 sm:$0xff]  }
 0x260   :  { %2907 = vmatprep.subr.bf16.mxu0 %v5190_v48  ;;  %3359 = vmatprep.subr.bf16.mxu1 %v5193_v49  ;;  %v393_v48 = vsub.s32 7, %v5859_v2 }
 0x261   :  { %v794_v58 = vpop.f32.mrb[48].mxu1  ;;  %2856 = vmatprep.mubr.bf16.mxu0 %v1082_v54  ;;  %3308 = vmatprep.mubr.bf16.mxu1 %v1082_v54  ;;  %v5215_v54 = vld [vmem:[#allocation2 + $0x5c8] ss:$16 sps:$4 sm:$0xff]  }
 0x262   :  { %v796_v60 = vpop.f32.mrb[49].mxu1  ;;  %2857 = vmatmul.mubr.bf16.gmra.mrb[92].mxu0 %v1081_v62  ;;  %3309 = vmatmul.mubr.bf16.gmra.mrb[108].mxu1 %v1081_v62  ;;  %v795_v7 = vadd.f32 %v794_v58, %v5971_v8 }
 0x263   :  { %2908 = vmatpush1.bf16.msra.mxu0 %v5188_v55  ;;  %v798_v38 = vpop.f32.mrb[50].mxu1  ;;  %3360 = vmatpush1.bf16.msra.mxu1 %v5191_v5  ;;  %v797_v22 = vadd.f32 %v796_v60, %v5976_v59  ;;  %v5220_v5 = vld [vmem:[#allocation2 + $0x5e4] ss:$16 sps:$4 sm:$0xff]   ;;  %v5218_v60 = vld [vmem:[#allocation2 + $0x5e0] ss:$16 sps:$4 sm:$0xff]  }
 0x264   :  { %v799_v42 = vadd.f32 %v798_v38, %v5971_v8  ;;  %v800_v13 = vpop.f32.mrb[51].mxu1  ;;  %2909 = vmatprep.subr.bf16.mxu0 %v5196_v56  ;;  %3361 = vmatprep.subr.bf16.mxu1 %v5199_v26  ;;  %v5223_v56 = vld [vmem:[#allocation2 + $0x5ec] ss:$16 sps:$4 sm:$0xff]  }
 0x265   :  { %v801_v16 = vadd.f32 %v800_v13, %v5976_v59 }
 0x266   :  { %v1089_v46 = vpack.c.bf16 %v799_v42, %v795_v7  ;;  %v5221_v7 = vld [vmem:[#allocation2 + $0x5e8] ss:$16 sps:$4 sm:$0xff]   ;;  %v5226_v42 = vld [vmem:[#allocation2 + $0x604] ss:$16 sps:$4 sm:$0xff]  }
 0x267   :  { %v1090_v17 = vpack.c.bf16 %v801_v16, %v797_v22  ;;  %2910 = vmatpush1.bf16.msra.mxu0 %v5194_v61  ;;  %3362 = vmatpush1.bf16.msra.mxu1 %v5197_v63 }
 0x268   :  { %2911 = vmatprep.subr.bf16.mxu0 %v5202_v14  ;;  %3363 = vmatprep.subr.bf16.mxu1 %v5205_v12  ;;  %v5229_v12 = vld [vmem:[#allocation2 + $0x60c] ss:$16 sps:$4 sm:$0xff]  }
 0x269   :  { %v804_v23 = vpop.f32.mrb[52].mxu1  ;;  %2866 = vmatprep.mubr.bf16.mxu0 %v1090_v17  ;;  %3318 = vmatprep.mubr.bf16.mxu1 %v1090_v17 }
 0x26a   :  { %v806_v24 = vpop.f32.mrb[53].mxu1  ;;  %2867 = vmatmul.mubr.bf16.gmra.mrb[96].mxu0 %v1089_v46  ;;  %3319 = vmatmul.mubr.bf16.gmra.mrb[112].mxu1 %v1089_v46  ;;  %v805_v34 = vadd.f32 %v804_v23, %v5971_v8  ;;  %v5224_v46 = vld [vmem:[#allocation2 + $0x600] ss:$16 sps:$4 sm:$0xff]  }
 0x26b   :  { %2912 = vmatpush1.bf16.msra.mxu0 %v5200_v18  ;;  %v808_v27 = vpop.f32.mrb[54].mxu1  ;;  %3364 = vmatpush1.bf16.msra.mxu1 %v5203_v19  ;;  %v807_v45 = vadd.f32 %v806_v24, %v5976_v59  ;;  %v5232_v18 = vld [vmem:[#allocation2 + $0x624] ss:$16 sps:$4 sm:$0xff]   ;;  %v5230_v23 = vld [vmem:[#allocation2 + $0x620] ss:$16 sps:$4 sm:$0xff]  }
 0x26c   :  { %v809_v35 = vadd.f32 %v808_v27, %v5971_v8  ;;  %v810_v37 = vpop.f32.mrb[55].mxu1  ;;  %2913 = vmatprep.subr.bf16.mxu0 %v5208_v20  ;;  %3365 = vmatprep.subr.bf16.mxu1 %v5211_v21  ;;  %v5352_v8 = vld [vmem:[%s6379_s4] sm:$0xff]  ;;  %v5235_v20 = vld [vmem:[#allocation2 + $0x62c] ss:$16 sps:$4 sm:$0xff]  }
 0x26d   :  { %v811_v47 = vadd.f32 %v810_v37, %v5976_v59  ;;  %v6031_v62 = vrot.slane %v5352_v8, %v389_v40  ;;  %v6033_v59 = vrot.slane %v5352_v8, %v393_v48  ;;  %v5233_v37 = vld [vmem:[#allocation2 + $0x628] ss:$16 sps:$4 sm:$0xff]   ;;  %v5241_v40 = vld [vmem:[#allocation2 + $0x64c] ss:$16 sps:$4 sm:$0xff]  }
 0x26e   :  { %v1097_v49 = vpack.c.bf16 %v809_v35, %v805_v34 }
 0x26f   :  { %v1098_v57 = vpack.c.bf16 %v811_v47, %v807_v45  ;;  %2914 = vmatpush1.bf16.msra.mxu0 %v5206_v29  ;;  %3366 = vmatpush1.bf16.msra.mxu1 %v5209_v30  ;;  %v5238_v30 = vld [vmem:[#allocation2 + $0x644] ss:$16 sps:$4 sm:$0xff]   ;;  %v5239_v45 = vld [vmem:[#allocation2 + $0x648] ss:$16 sps:$4 sm:$0xff]  }
 0x270   :  { %2915 = vmatprep.subr.bf16.mxu0 %v5214_v31  ;;  %3367 = vmatprep.subr.bf16.mxu1 %v5217_v44  ;;  %v5236_v44 = vld [vmem:[#allocation2 + $0x640] ss:$16 sps:$4 sm:$0xff]   ;;  %v5244_v47 = vld [vmem:[#allocation2 + $0x664] ss:$16 sps:$4 sm:$0xff]  }
 0x271   :  { %v960_v55 = vpop.f32.mrb[56].mxu1  ;;  %2876 = vmatprep.mubr.bf16.mxu0 %v1098_v57  ;;  %3328 = vmatprep.mubr.bf16.mxu1 %v1098_v57 }
 0x272   :  { %v962_v26 = vpop.f32.mrb[57].mxu1  ;;  %2877 = vmatmul.mubr.bf16.gmra.mrb[100].mxu0 %v1097_v49  ;;  %3329 = vmatmul.mubr.bf16.gmra.mrb[116].mxu1 %v1097_v49  ;;  %v961_v38 = vadd.f32 %v960_v55, %v6031_v62  ;;  %v5247_v49 = vld [vmem:[#allocation2 + $0x66c] ss:$16 sps:$4 sm:$0xff]  }
 0x273   :  { %2916 = vmatpush1.bf16.msra.mxu0 %v5212_v51  ;;  %v964_v58 = vpop.f32.mrb[58].mxu1  ;;  %2919 = vmatprep.mubr.bf16.mxu0 %v5904_v6  ;;  %v963_v13 = vadd.f32 %v962_v26, %v6033_v59  ;;  %v5242_v51 = vld [vmem:[#allocation2 + $0x660] ss:$16 sps:$4 sm:$0xff]  }
 0x274   :  { %v965_v61 = vadd.f32 %v964_v58, %v6031_v62  ;;  %3368 = vmatpush1.bf16.msra.mxu1 %v5215_v54  ;;  %3371 = vmatprep.mubr.bf16.mxu1 %v5904_v6  ;;  %v966_v63 = vpop.f32.mrb[59].mxu1  ;;  %v5227_v6 = vld [vmem:[#allocation2 + $0x608] ss:$16 sps:$4 sm:$0xff]  }
 0x275   :  { %v967_v14 = vadd.f32 %v966_v63, %v6033_v59  ;;  %2917 = vmatprep.subr.bf16.mxu0 %v5220_v5  ;;  %3369 = vmatprep.subr.bf16.mxu1 %v5223_v56  ;;  %v5250_v5 = vld [vmem:[#allocation2 + $0x684] ss:$16 sps:$4 sm:$0xff]   ;;  %v5245_v58 = vld [vmem:[#allocation2 + $0x668] ss:$16 sps:$4 sm:$0xff]  }
 0x276   :  { %v6041_v22 = vpack.c.bf16 %v965_v61, %v961_v38  ;;  %v5248_v61 = vld [vmem:[#allocation2 + $0x680] ss:$16 sps:$4 sm:$0xff]   ;;  %v5251_v63 = vld [vmem:[#allocation2 + $0x688] ss:$16 sps:$4 sm:$0xff]  }
 0x277   :  { %v6043_v16 = vpack.c.bf16 %v967_v14, %v963_v13  ;;  %2918 = vmatpush1.bf16.msra.mxu0 %v5218_v60  ;;  %v5253_v60 = vld [vmem:[#allocation2 + $0x68c] ss:$16 sps:$4 sm:$0xff]  }
 0x278   :  { %3370 = vmatpush1.bf16.msra.mxu1 %v5221_v7  ;;  %3000 = vmatprep.subr.bf16.mxu0 %v5226_v42  ;;  %v5256_v7 = vld [vmem:[#allocation2 + $0x6a4] ss:$16 sps:$4 sm:$0xff]   ;;  %v5259_v13 = vld [vmem:[#allocation2 + $0x6ac] ss:$16 sps:$4 sm:$0xff]  }
 0x279   :  { %v970_v17 = vpop.f32.mrb[60].mxu1  ;;  %3452 = vmatprep.subr.bf16.mxu1 %v5229_v12  ;;  %v5254_v12 = vld [vmem:[#allocation2 + $0x6a0] ss:$16 sps:$4 sm:$0xff]  }
 0x27a   :  { %v972_v19 = vpop.f32.mrb[61].mxu1  ;;  %2920 = vmatmul.mubr.bf16.vlgmr.msra.gmra.mrb[72].mxu0 %v5902_v50  ;;  %v971_v24 = vadd.f32 %v970_v17, %v6031_v62 }
 0x27b   :  { %3001 = vmatpush1.bf16.msra.mxu0 %v5224_v46  ;;  %3372 = vmatmul.mubr.bf16.vlgmr.msra.gmra.mrb[88].mxu1 %v5902_v50  ;;  %v974_v21 = vpop.f32.mrb[62].mxu1  ;;  %v973_v34 = vadd.f32 %v972_v19, %v6033_v59 }
 0x27c   :  { %v975_v27 = vadd.f32 %v974_v21, %v6031_v62  ;;  %2929 = vmatprep.mubr.bf16.mxu0 %v5916_v39  ;;  %3381 = vmatprep.mubr.bf16.mxu1 %v5916_v39  ;;  %v976_v29 = vpop.f32.mrb[63].mxu1  ;;  %v5257_v21 = vld [vmem:[#allocation2 + $0x6a8] ss:$16 sps:$4 sm:$0xff]  }
 0x27d   :  { %3453 = vmatpush1.bf16.msra.mxu1 %v5227_v6  ;;  %v977_v35 = vadd.f32 %v976_v29, %v6033_v59  ;;  %3002 = vmatprep.subr.bf16.mxu0 %v5232_v18  ;;  %v5262_v18 = vld [vmem:[#allocation2 + $0x6c4] ss:$16 sps:$4 sm:$0xff]   ;;  %v5263_v29 = vld [vmem:[#allocation2 + $0x6c8] ss:$16 sps:$4 sm:$0xff]  }
 0x27e   :  { %v6053_v50 = vpack.c.bf16 %v975_v27, %v971_v24  ;;  %3454 = vmatprep.subr.bf16.mxu1 %v5235_v20  ;;  %v5260_v27 = vld [vmem:[#allocation2 + $0x6c0] ss:$16 sps:$4 sm:$0xff]  }
 0x27f   :  { %v6055_v31 = vpack.c.bf16 %v977_v35, %v973_v34  ;;  %3003 = vmatpush1.bf16.msra.mxu0 %v5230_v23  ;;  %v5265_v23 = vld [vmem:[#allocation2 + $0x6cc] ss:$16 sps:$4 sm:$0xff]  }
 0x280   :  { %3004 = vmatprep.subr.bf16.mxu0 %v5238_v30  ;;  %v5268_v30 = vld [vmem:[#allocation2 + $0x6e4] ss:$16 sps:$4 sm:$0xff]   ;;  %v5271_v35 = vld [vmem:[#allocation2 + $0x6ec] ss:$16 sps:$4 sm:$0xff]  }
 0x281   :  { %3455 = vmatpush1.bf16.msra.mxu1 %v5233_v37  ;;  %v980_v39 = vpop.f32.mrb[64].mxu1 }
 0x282   :  { %v982_v48 = vpop.f32.mrb[65].mxu1  ;;  %2930 = vmatmul.mubr.bf16.gmra.mrb[76].mxu0 %v5914_v36  ;;  %3456 = vmatprep.subr.bf16.mxu1 %v5241_v40  ;;  %v981_v8 = vadd.f32 %v980_v39, %v6031_v62  ;;  %v5266_v40 = vld [vmem:[#allocation2 + $0x6e0] ss:$16 sps:$4 sm:$0xff]  }
 0x283   :  { %3005 = vmatpush1.bf16.msra.mxu0 %v5236_v44  ;;  %3382 = vmatmul.mubr.bf16.gmra.mrb[92].mxu1 %v5914_v36  ;;  %v984_v57 = vpop.f32.mrb[66].mxu1  ;;  %v983_v56 = vadd.f32 %v982_v48, %v6033_v59 }
 0x284   :  { %v985_v54 = vadd.f32 %v984_v57, %v6031_v62  ;;  %2939 = vmatprep.mubr.bf16.mxu0 %v5928_v9  ;;  %3391 = vmatprep.mubr.bf16.mxu1 %v5928_v9  ;;  %v986_v55 = vpop.f32.mrb[67].mxu1  ;;  %v5269_v57 = vld [vmem:[#allocation2 + $0x6e8] ss:$16 sps:$4 sm:$0xff]  }
 0x285   :  { %3457 = vmatpush1.bf16.msra.mxu1 %v5239_v45  ;;  %v987_v26 = vadd.f32 %v986_v55, %v6033_v59  ;;  %3006 = vmatprep.subr.bf16.mxu0 %v5244_v47  ;;  %v5274_v47 = vld [vmem:[#allocation2 + $0x704] ss:$16 sps:$4 sm:$0xff]   ;;  %v5275_v55 = vld [vmem:[#allocation2 + $0x708] ss:$16 sps:$4 sm:$0xff]  }
 0x286   :  { %v6065_v36 = vpack.c.bf16 %v985_v54, %v981_v8  ;;  %3458 = vmatprep.subr.bf16.mxu1 %v5247_v49  ;;  %v5272_v54 = vld [vmem:[#allocation2 + $0x700] ss:$16 sps:$4 sm:$0xff]  }
 0x287   :  { %v6067_v38 = vpack.c.bf16 %v987_v26, %v983_v56  ;;  %3007 = vmatpush1.bf16.msra.mxu0 %v5242_v51  ;;  %v5277_v51 = vld [vmem:[#allocation2 + $0x70c] ss:$16 sps:$4 sm:$0xff]  }
 0x288   :  { %3008 = vmatprep.subr.bf16.mxu0 %v5250_v5  ;;  %v5280_v5 = vld [vmem:[#allocation2 + $0x724] ss:$16 sps:$4 sm:$0xff]   ;;  %v5283_v26 = vld [vmem:[#allocation2 + $0x72c] ss:$16 sps:$4 sm:$0xff]  }
 0x289   :  { %3459 = vmatpush1.bf16.msra.mxu1 %v5245_v58  ;;  %v990_v9 = vpop.f32.mrb[68].mxu1 }
 0x28a   :  { %v992_v42 = vpop.f32.mrb[69].mxu1  ;;  %2940 = vmatmul.mubr.bf16.gmra.mrb[80].mxu0 %v5926_v4  ;;  %3460 = vmatprep.subr.bf16.mxu1 %v5253_v60  ;;  %v991_v46 = vadd.f32 %v990_v9, %v6031_v62  ;;  %v5278_v60 = vld [vmem:[#allocation2 + $0x720] ss:$16 sps:$4 sm:$0xff]  }
 0x28b   :  { %3009 = vmatpush1.bf16.msra.mxu0 %v5248_v61  ;;  %3392 = vmatmul.mubr.bf16.gmra.mrb[96].mxu1 %v5926_v4  ;;  %v994_v14 = vpop.f32.mrb[70].mxu1  ;;  %v993_v19 = vadd.f32 %v992_v42, %v6033_v59 }
 0x28c   :  { %v995_v17 = vadd.f32 %v994_v14, %v6031_v62  ;;  %2949 = vmatprep.mubr.bf16.mxu0 %v5940_v43  ;;  %3401 = vmatprep.mubr.bf16.mxu1 %v5940_v43  ;;  %v996_v6 = vpop.f32.mrb[71].mxu1  ;;  %v5281_v14 = vld [vmem:[#allocation2 + $0x728] ss:$16 sps:$4 sm:$0xff]  }
 0x28d   :  { %3461 = vmatpush1.bf16.msra.mxu1 %v5251_v63  ;;  %v997_v20 = vadd.f32 %v996_v6, %v6033_v59  ;;  %3010 = vmatprep.subr.bf16.mxu0 %v5256_v7  ;;  %v5286_v7 = vld [vmem:[#allocation2 + $0x744] ss:$16 sps:$4 sm:$0xff]   ;;  %v5287_v6 = vld [vmem:[#allocation2 + $0x748] ss:$16 sps:$4 sm:$0xff]  }
 0x28e   :  { %v6077_v4 = vpack.c.bf16 %v995_v17, %v991_v46  ;;  %3462 = vmatprep.subr.bf16.mxu1 %v5259_v13  ;;  %v5284_v17 = vld [vmem:[#allocation2 + $0x740] ss:$16 sps:$4 sm:$0xff]  }
 0x28f   :  { %v6079_v24 = vpack.c.bf16 %v997_v20, %v993_v19  ;;  %3011 = vmatpush1.bf16.msra.mxu0 %v5254_v12  ;;  %v5289_v12 = vld [vmem:[#allocation2 + $0x74c] ss:$16 sps:$4 sm:$0xff]  }
 0x290   :  { %3012 = vmatprep.subr.bf16.mxu0 %v5262_v18  ;;  %v5292_v18 = vld [vmem:[#allocation2 + $0x764] ss:$16 sps:$4 sm:$0xff]   ;;  %v5295_v20 = vld [vmem:[#allocation2 + $0x76c] ss:$16 sps:$4 sm:$0xff]  }
 0x291   :  { %3463 = vmatpush1.bf16.msra.mxu1 %v5257_v21  ;;  %v1000_v43 = vpop.f32.mrb[72].mxu1 }
 0x292   :  { %v1002_v34 = vpop.f32.mrb[73].mxu1  ;;  %2950 = vmatmul.mubr.bf16.gmra.mrb[84].mxu0 %v5938_v41  ;;  %3464 = vmatprep.subr.bf16.mxu1 %v5265_v23  ;;  %v1001_v44 = vadd.f32 %v1000_v43, %v6031_v62  ;;  %v5290_v23 = vld [vmem:[#allocation2 + $0x760] ss:$16 sps:$4 sm:$0xff]  }
 0x293   :  { %3013 = vmatpush1.bf16.msra.mxu0 %v5260_v27  ;;  %3402 = vmatmul.mubr.bf16.gmra.mrb[100].mxu1 %v5938_v41  ;;  %v1004_v37 = vpop.f32.mrb[74].mxu1  ;;  %v1003_v48 = vadd.f32 %v1002_v34, %v6033_v59 }
 0x294   :  { %v1005_v39 = vadd.f32 %v1004_v37, %v6031_v62  ;;  %2959 = vmatprep.mubr.bf16.mxu0 %v5952_v15  ;;  %3411 = vmatprep.mubr.bf16.mxu1 %v5952_v15  ;;  %v1006_v45 = vpop.f32.mrb[75].mxu1  ;;  %v5293_v37 = vld [vmem:[#allocation2 + $0x768] ss:$16 sps:$4 sm:$0xff]  }
 0x295   :  { %3465 = vmatpush1.bf16.msra.mxu1 %v5263_v29  ;;  %v1007_v49 = vadd.f32 %v1006_v45, %v6033_v59  ;;  %3014 = vmatprep.subr.bf16.mxu0 %v5268_v30  ;;  %v5298_v30 = vld [vmem:[#allocation2 + $0x784] ss:$16 sps:$4 sm:$0xff]   ;;  %v5299_v45 = vld [vmem:[#allocation2 + $0x788] ss:$16 sps:$4 sm:$0xff]  }
 0x296   :  { %v6089_v41 = vpack.c.bf16 %v1005_v39, %v1001_v44  ;;  %3466 = vmatprep.subr.bf16.mxu1 %v5271_v35  ;;  %v5296_v39 = vld [vmem:[#allocation2 + $0x780] ss:$16 sps:$4 sm:$0xff]  }
 0x297   :  { %v6091_v8 = vpack.c.bf16 %v1007_v49, %v1003_v48  ;;  %3015 = vmatpush1.bf16.msra.mxu0 %v5266_v40  ;;  %v5301_v40 = vld [vmem:[#allocation2 + $0x78c] ss:$16 sps:$4 sm:$0xff]  }
 0x298   :  { %3016 = vmatprep.subr.bf16.mxu0 %v5274_v47  ;;  %v5304_v47 = vld [vmem:[#allocation2 + $0x7a4] ss:$16 sps:$4 sm:$0xff]   ;;  %v5307_v49 = vld [vmem:[#allocation2 + $0x7ac] ss:$16 sps:$4 sm:$0xff]  }
 0x299   :  { %3467 = vmatpush1.bf16.msra.mxu1 %v5269_v57  ;;  %v1010_v15 = vpop.f32.mrb[76].mxu1 }
 0x29a   :  { %v1012_v56 = vpop.f32.mrb[77].mxu1  ;;  %2960 = vmatmul.mubr.bf16.gmra.mrb[88].mxu0 %v5950_v11  ;;  %3468 = vmatprep.subr.bf16.mxu1 %v5277_v51  ;;  %v1011_v61 = vadd.f32 %v1010_v15, %v6031_v62  ;;  %v5302_v51 = vld [vmem:[#allocation2 + $0x7a0] ss:$16 sps:$4 sm:$0xff]  }
 0x29b   :  { %3017 = vmatpush1.bf16.msra.mxu0 %v5272_v54  ;;  %3412 = vmatmul.mubr.bf16.gmra.mrb[104].mxu1 %v5950_v11  ;;  %v1014_v58 = vpop.f32.mrb[78].mxu1  ;;  %v1013_v42 = vadd.f32 %v1012_v56, %v6033_v59 }
 0x29c   :  { %v1015_v9 = vadd.f32 %v1014_v58, %v6031_v62  ;;  %2969 = vmatprep.mubr.bf16.mxu0 %v5966_v53  ;;  %3421 = vmatprep.mubr.bf16.mxu1 %v5966_v53  ;;  %v1016_v63 = vpop.f32.mrb[79].mxu1  ;;  %v5305_v58 = vld [vmem:[#allocation2 + $0x7a8] ss:$16 sps:$4 sm:$0xff]  }
 0x29d   :  { %3469 = vmatpush1.bf16.msra.mxu1 %v5275_v55  ;;  %v1017_v13 = vadd.f32 %v1016_v63, %v6033_v59  ;;  %3018 = vmatprep.subr.bf16.mxu0 %v5280_v5  ;;  %v5310_v5 = vld [vmem:[#allocation2 + $0x7c4] ss:$16 sps:$4 sm:$0xff]   ;;  %v5319_v63 = vld [vmem:[#allocation2 + $0x7ec] ss:$16 sps:$4 sm:$0xff]  }
 0x29e   :  { %v6101_v11 = vpack.c.bf16 %v1015_v9, %v1011_v61  ;;  %3470 = vmatprep.subr.bf16.mxu1 %v5283_v26  ;;  %v5316_v9 = vld [vmem:[#allocation2 + $0x7e4] ss:$16 sps:$4 sm:$0xff]  }
 0x29f   :  { %v6103_v46 = vpack.c.bf16 %v1017_v13, %v1013_v42  ;;  %3019 = vmatpush1.bf16.msra.mxu0 %v5278_v60  ;;  %v5313_v60 = vld [vmem:[#allocation2 + $0x7cc] ss:$16 sps:$4 sm:$0xff]   ;;  %v5317_v42 = vld [vmem:[#allocation2 + $0x7e8] ss:$16 sps:$4 sm:$0xff]   ;;  %v5322_v13 = vld [vmem:[%s6382_s7 + $0xc0] sm:$0xff]  }
 0x2a0   :  { %3020 = vmatprep.subr.bf16.mxu0 %v5286_v7  ;;  %v5320_v7 = vld [vmem:[%s6382_s7 + $0x40] sm:$0xff]  }
 0x2a1   :  { %3471 = vmatpush1.bf16.msra.mxu1 %v5281_v14  ;;  %v1020_v53 = vpop.f32.mrb[80].mxu1  ;;  %v5323_v14 = vld [vmem:[%s6382_s7 + $0x80] sm:$0xff]  }
 0x2a2   :  { %v1022_v19 = vpop.f32.mrb[81].mxu1  ;;  %2970 = vmatmul.mubr.bf16.gmra.mrb[92].mxu0 %v5964_v52  ;;  %3472 = vmatprep.subr.bf16.mxu1 %v5289_v12  ;;  %v1021_v27 = vadd.f32 %v1020_v53, %v6031_v62  ;;  %v5326_v12 = vld [vmem:[%s6382_s7 + $0xc8] sm:$0xff]   ;;  %v5328_v53 = vld [vmem:[%s6382_s7 + $0x50] sm:$0xff]  }
 0x2a3   :  { %3021 = vmatpush1.bf16.msra.mxu0 %v5284_v17  ;;  %3422 = vmatmul.mubr.bf16.gmra.mrb[108].mxu1 %v5964_v52  ;;  %v1024_v21 = vpop.f32.mrb[82].mxu1  ;;  %v1023_v34 = vadd.f32 %v1022_v19, %v6033_v59  ;;  %v5325_v17 = vld [vmem:[%s6382_s7 + $0x8] sm:$0xff]   ;;  %v5331_v19 = vld [vmem:[%s6382_s7 + $0x90] sm:$0xff]  }
 0x2a4   :  { %v1025_v43 = vadd.f32 %v1024_v21, %v6031_v62  ;;  %2979 = vmatprep.mubr.bf16.mxu0 %v5988_v28  ;;  %3431 = vmatprep.mubr.bf16.mxu1 %v5988_v28  ;;  %v1026_v29 = vpop.f32.mrb[83].mxu1  ;;  %v5333_v21 = vld [vmem:[%s6382_s7 + $0x18] sm:$0xff]  }
 0x2a5   :  { %3473 = vmatpush1.bf16.msra.mxu1 %v5287_v6  ;;  %v1027_v35 = vadd.f32 %v1026_v29, %v6033_v59  ;;  %3022 = vmatprep.subr.bf16.mxu0 %v5292_v18  ;;  %v5327_v6 = vld [vmem:[%s6382_s7 + $0x88] sm:$0xff]   ;;  %v5330_v18 = vld [vmem:[%s6382_s7 + $0xd0] sm:$0xff]   ;;  %v5339_v29 = vld [vmem:[%s6382_s7 + $0xa0] sm:$0xff]  }
 0x2a6   :  { %v6113_v52 = vpack.c.bf16 %v1025_v43, %v1021_v27  ;;  %3474 = vmatprep.subr.bf16.mxu1 %v5295_v20  ;;  %v5334_v20 = vld [vmem:[%s6382_s7 + $0xd8] sm:$0xff]   ;;  %v5338_v43 = vld [vmem:[%s6382_s7 + $0xe0] sm:$0xff]  }
 0x2a7   :  { %v6115_v44 = vpack.c.bf16 %v1027_v35, %v1023_v34  ;;  %3023 = vmatpush1.bf16.msra.mxu0 %v5290_v23  ;;  %v5336_v23 = vld [vmem:[%s6382_s7 + $0x60] sm:$0xff]   ;;  %v5335_v27 = vld [vmem:[%s6382_s7 + $0x98] sm:$0xff]   ;;  %v5341_v34 = vld [vmem:[%s6382_s7 + $0x28] sm:$0xff]  }
 0x2a8   :  { %3024 = vmatprep.subr.bf16.mxu0 %v5298_v30  ;;  %v5342_v30 = vld [vmem:[%s6382_s7 + $0xe8] sm:$0xff]   ;;  %v5344_v35 = vld [vmem:[%s6382_s7 + $0x70] sm:$0xff]  }
 0x2a9   :  { %3475 = vmatpush1.bf16.msra.mxu1 %v5293_v37  ;;  %v1030_v28 = vpop.f32.mrb[84].mxu1  ;;  %v5343_v37 = vld [vmem:[%s6382_s7 + $0xa8] sm:$0xff]  }
 0x2aa   :  { %v1032_v48 = vpop.f32.mrb[85].mxu1  ;;  %2980 = vmatmul.mubr.bf16.gmra.mrb[96].mxu0 %v5986_v25  ;;  %3476 = vmatprep.subr.bf16.mxu1 %v5301_v40  ;;  %v1031_v54 = vadd.f32 %v1030_v28, %v6031_v62  ;;  %v5346_v40 = vld [vmem:[%s6382_s7 + $0xf0] sm:$0xff]  }
 0x2ab   :  { %3025 = vmatpush1.bf16.msra.mxu0 %v5296_v39  ;;  %3432 = vmatmul.mubr.bf16.gmra.mrb[112].mxu1 %v5986_v25  ;;  %v1034_v57 = vpop.f32.mrb[86].mxu1  ;;  %v1033_v56 = vadd.f32 %v1032_v48, %v6033_v59 }
 0x2ac   :  { %v1035_v15 = vadd.f32 %v1034_v57, %v6031_v62  ;;  %2989 = vmatprep.mubr.bf16.mxu0 %v6000_v10  ;;  %3441 = vmatprep.mubr.bf16.mxu1 %v6000_v10  ;;  %v1036_v55 = vpop.f32.mrb[87].mxu1  ;;  %v5308_v62 = vld [vmem:[#allocation2 + $0x7c0] ss:$16 sps:$4 sm:$0xff]   ;;  %v5311_v10 = vld [vmem:[#allocation2 + $0x7c8] ss:$16 sps:$4 sm:$0xff]  }
 0x2ad   :  { %3477 = vmatpush1.bf16.msra.mxu1 %v5299_v45  ;;  %v1037_v26 = vadd.f32 %v1036_v55, %v6033_v59  ;;  %3026 = vmatprep.subr.bf16.mxu0 %v5304_v47  ;;  %v5314_v59 = vld [vmem:[#allocation2 + $0x7e0] ss:$16 sps:$4 sm:$0xff]  }
 0x2ae   :  { %v6125_v25 = vpack.c.bf16 %v1035_v15, %v1031_v54  ;;  %3478 = vmatprep.subr.bf16.mxu1 %v5307_v49 }
 0x2af   :  { %v6127_v61 = vpack.c.bf16 %v1037_v26, %v1033_v56  ;;  %3027 = vmatpush1.bf16.msra.mxu0 %v5302_v51 }
 0x2b0   :  { %3028 = vmatprep.subr.bf16.mxu0 %v5310_v5 }
 0x2b1   :  { %3479 = vmatpush1.bf16.msra.mxu1 %v5305_v58 }
 0x2b2   :  { %2990 = vmatmul.mubr.bf16.gmra.mrb[100].mxu0 %v5998_v1  ;;  %3480 = vmatprep.subr.bf16.mxu1 %v5313_v60 }
 0x2b3   :  { %3029 = vmatpush1.bf16.msra.mxu0 %v5308_v62  ;;  %3442 = vmatmul.mubr.bf16.gmra.mrb[116].mxu1 %v5998_v1  ;;  %v5321_v1 = vld [vmem:[%s6382_s7] sm:$0xff]  }
 0x2b4   :  { %3032 = vmatprep.mubr.bf16.mxu0 %v6043_v16  ;;  %3484 = vmatprep.mubr.bf16.mxu1 %v6043_v16  ;;  %v5324_v16 = vld [vmem:[%s6382_s7 + $0x48] sm:$0xff]  }
 0x2b5   :  { %3481 = vmatpush1.bf16.msra.mxu1 %v5311_v10  ;;  %3030 = vmatprep.subr.bf16.mxu0 %v5316_v9 }
 0x2b6   :  { %3482 = vmatprep.subr.bf16.mxu1 %v5319_v63 }
 0x2b7   :  { %3031 = vmatpush1.bf16.msra.mxu0 %v5314_v59 }
 0x2b8   :  { %4525 = vmatprep.subr.bf16.mxu0 %v5320_v7 }
 0x2b9   :  { %3483 = vmatpush1.bf16.msra.mxu1 %v5317_v42 }
 0x2ba   :  { %3033 = vmatmul.mubr.bf16.vlgmr.msra.gmra.mrb[72].mxu0 %v6041_v22  ;;  %4589 = vmatprep.subr.bf16.mxu1 %v5322_v13 }
 0x2bb   :  { %3042 = vmatprep.mubr.bf16.mxu0 %v6055_v31  ;;  %4526 = vmatpush3.bf16.msra.mxu0 %v5321_v1 }
 0x2bc   :  { %3485 = vmatmul.mubr.bf16.vlgmr.msra.gmra.mrb[88].mxu1 %v6041_v22  ;;  %4527 = vmatprep.subr.bf16.mxu0 %v5324_v16  ;;  %v5329_v22 = vld [vmem:[%s6382_s7 + $0x10] sm:$0xff]  }
 0x2bd   :  { %3494 = vmatprep.mubr.bf16.mxu1 %v6055_v31  ;;  %4590 = vmatpush3.bf16.msra.mxu1 %v5323_v14  ;;  %v5332_v31 = vld [vmem:[%s6382_s7 + $0x58] sm:$0xff]  }
 0x2be   :  { %4591 = vmatprep.subr.bf16.mxu1 %v5326_v12 }
 0x2bf   :  { %4528 = vmatpush3.bf16.msra.mxu0 %v5325_v17 }
 0x2c0   :  { %4529 = vmatprep.subr.bf16.mxu0 %v5328_v53 }
 0x2c1   :  { %4592 = vmatpush3.bf16.msra.mxu1 %v5327_v6 }
 0x2c2   :  { %3043 = vmatmul.mubr.bf16.gmra.mrb[76].mxu0 %v6053_v50  ;;  %4593 = vmatprep.subr.bf16.mxu1 %v5330_v18 }
 0x2c3   :  { %3052 = vmatprep.mubr.bf16.mxu0 %v6067_v38  ;;  %4530 = vmatpush3.bf16.msra.mxu0 %v5329_v22 }
 0x2c4   :  { %3495 = vmatmul.mubr.bf16.gmra.mrb[92].mxu1 %v6053_v50  ;;  %4531 = vmatprep.subr.bf16.mxu0 %v5332_v31  ;;  %v5337_v50 = vld [vmem:[%s6382_s7 + $0x20] sm:$0xff]  }
 0x2c5   :  { %3504 = vmatprep.mubr.bf16.mxu1 %v6067_v38  ;;  %4594 = vmatpush3.bf16.msra.mxu1 %v5331_v19  ;;  %v5340_v38 = vld [vmem:[%s6382_s7 + $0x68] sm:$0xff]  }
 0x2c6   :  { %4595 = vmatprep.subr.bf16.mxu1 %v5334_v20 }
 0x2c7   :  { %4532 = vmatpush3.bf16.msra.mxu0 %v5333_v21 }
 0x2c8   :  { %4533 = vmatprep.subr.bf16.mxu0 %v5336_v23 }
 0x2c9   :  { %4596 = vmatpush3.bf16.msra.mxu1 %v5335_v27 }
 0x2ca   :  { %3053 = vmatmul.mubr.bf16.gmra.mrb[80].mxu0 %v6065_v36  ;;  %4597 = vmatprep.subr.bf16.mxu1 %v5338_v43 }
 0x2cb   :  { %3062 = vmatprep.mubr.bf16.mxu0 %v6079_v24  ;;  %4534 = vmatpush3.bf16.msra.mxu0 %v5337_v50 }
 0x2cc   :  { %3505 = vmatmul.mubr.bf16.gmra.mrb[96].mxu1 %v6065_v36  ;;  %4535 = vmatprep.subr.bf16.mxu0 %v5340_v38  ;;  %v5345_v36 = vld [vmem:[%s6382_s7 + $0x30] sm:$0xff]  }
 0x2cd   :  { %3514 = vmatprep.mubr.bf16.mxu1 %v6079_v24  ;;  %4598 = vmatpush3.bf16.msra.mxu1 %v5339_v29  ;;  %v5347_v24 = vld [vmem:[%s6382_s7 + $0xb0] sm:$0xff]  }
 0x2ce   :  { %4599 = vmatprep.subr.bf16.mxu1 %v5342_v30 }
 0x2cf   :  { %4536 = vmatpush3.bf16.msra.mxu0 %v5341_v34 }
 0x2d0   :  { %4537 = vmatprep.subr.bf16.mxu0 %v5344_v35 }
 0x2d1   :  { %4600 = vmatpush3.bf16.msra.mxu1 %v5343_v37 }
 0x2d2   :  { %3063 = vmatmul.mubr.bf16.gmra.mrb[84].mxu0 %v6077_v4  ;;  %4601 = vmatprep.subr.bf16.mxu1 %v5346_v40 }
 0x2d3   :  { %3072 = vmatprep.mubr.bf16.mxu0 %v6091_v8  ;;  %4538 = vmatpush3.bf16.msra.mxu0 %v5345_v36 }
 0x2d4   :  { %3515 = vmatmul.mubr.bf16.gmra.mrb[100].mxu1 %v6077_v4  ;;  %v5348_v4 = vld [vmem:[%s6382_s7 + $0x78] sm:$0xff]  }
 0x2d5   :  { %3524 = vmatprep.mubr.bf16.mxu1 %v6091_v8  ;;  %4602 = vmatpush3.bf16.msra.mxu1 %v5347_v24  ;;  %v5349_v8 = vld [vmem:[%s6382_s7 + $0x38] sm:$0xff]  }
 0x2d6   :  { %4539 = vmatprep.subr.bf16.mxu0 %v5348_v4 }
 0x2d7   :  { %4540 = vmatpush3.bf16.msra.mxu0 %v5349_v8 }
 0x2da   :  { %3073 = vmatmul.mubr.bf16.gmra.mrb[88].mxu0 %v6089_v41 }
 0x2db   :  { %3082 = vmatprep.mubr.bf16.mxu0 %v6103_v46 }
 0x2dc   :  { %3525 = vmatmul.mubr.bf16.gmra.mrb[104].mxu1 %v6089_v41  ;;  %v5350_v41 = vld [vmem:[%s6382_s7 + $0xf8] sm:$0xff]  }
 0x2dd   :  { %3534 = vmatprep.mubr.bf16.mxu1 %v6103_v46  ;;  %4603 = vmatprep.subr.bf16.mxu1 %v5350_v41  ;;  %v1359_v46 = vld [vmem:[%s6381_s6] sm:$0xf] }
 0x2de   :  { %v6272_v39 = vrot.slane %v1359_v46, %v373_v32  ;;  %v6276_v45 = vrot.slane %v1359_v46, %v377_v33 }
 0x2e2   :  { %3083 = vmatmul.mubr.bf16.gmra.mrb[92].mxu0 %v6101_v11 }
 0x2e3   :  { %3092 = vmatprep.mubr.bf16.mxu0 %v6115_v44 }
 0x2e4   :  { %3535 = vmatmul.mubr.bf16.gmra.mrb[108].mxu1 %v6101_v11  ;;  %v5351_v11 = vld [vmem:[%s6382_s7 + $0xb8] sm:$0xff]  }
 0x2e5   :  { %3544 = vmatprep.mubr.bf16.mxu1 %v6115_v44  ;;  %4604 = vmatpush3.bf16.msra.mxu1 %v5351_v11  ;;  %v6268_v44 = vrot.slane %v1359_v46, %v369_v3 }
 0x2ea   :  { %3093 = vmatmul.mubr.bf16.gmra.mrb[96].mxu0 %v6113_v52 }
 0x2eb   :  { %3102 = vmatprep.mubr.bf16.mxu0 %v6127_v61 }
 0x2ec   :  { %3545 = vmatmul.mubr.bf16.gmra.mrb[112].mxu1 %v6113_v52  ;;  %v6264_v52 = vrot.slane %v1359_v46, %v365_v0 }
 0x2ed   :  { %3554 = vmatprep.mubr.bf16.mxu1 %v6127_v61 }
 0x2f2   :  { %3103 = vmatmul.mubr.bf16.gmra.mrb[100].mxu0 %v6125_v25 }
 0x2f4   :  { %3555 = vmatmul.mubr.bf16.gmra.mrb[116].mxu1 %v6125_v25 }
 0x38d   :  { %v3034_v28 = vpop.f32.mrb[72].mxu0 }
 0x38e   :  { %v4661_v47 = vadd.f32 %v3034_v28, %v6264_v52  ;;  %v3036_v48 = vpop.f32.mrb[73].mxu0 }
 0x38f   :  { %v3486_v49 = vpop.f32.mrb[88].mxu1  ;;  %v4662_v0 = vadd.f32 %v3036_v48, %v6268_v44  ;;  %v3038_v57 = vpop.f32.mrb[74].mxu0 }
 0x390   :  { %v4693_v51 = vadd.f32 %v3486_v49, %v6272_v39  ;;  %v3488_v3 = vpop.f32.mrb[89].mxu1  ;;  %v4663_v54 = vadd.f32 %v3038_v57, %v6264_v52  ;;  %v3040_v15 = vpop.f32.mrb[75].mxu0  ;;  %v3565_v33 = vmax.f32 %v4661_v47, 0.0 }
 0x391   :  { %v4694_v32 = vadd.f32 %v3488_v3, %v6276_v45  ;;  %v3490_v55 = vpop.f32.mrb[90].mxu1  ;;  %v4664_v2 = vadd.f32 %v3040_v15, %v6268_v44  ;;  %v3566_v58 = vmax.f32 %v4662_v0, 0.0 }
 0x392   :  { %v3569_v5 = vmax.f32 %v4663_v54, 0.0  ;;  %v4695_v56 = vadd.f32 %v3490_v55, %v6272_v39  ;;  %v3492_v26 = vpop.f32.mrb[91].mxu1  ;;  %v3567_v61 = vmax.f32 %v4693_v51, 0.0 }
 0x393   :  { %v3570_v25 = vmax.f32 %v4664_v2, 0.0  ;;  %v4696_v60 = vadd.f32 %v3492_v26, %v6276_v45  ;;  %v3568_v9 = vmax.f32 %v4694_v32, 0.0 }
 0x394   :  { %v3629_v62 = vpack.c.bf16 %v3569_v5, %v3565_v33  ;;  %v3571_v10 = vmax.f32 %v4695_v56, 0.0 }
 0x395   :  { %v3630_v63 = vpack.c.bf16 %v3570_v25, %v3566_v58  ;;  %v3572_v59 = vmax.f32 %v4696_v60, 0.0  ;;  %v3044_v7 = vpop.f32.mrb[76].mxu0 }
 0x396   :  { %v3631_v42 = vpack.c.bf16 %v3571_v10, %v3567_v61  ;;  %v4665_v13 = vadd.f32 %v3044_v7, %v6264_v52  ;;  %v3046_v1 = vpop.f32.mrb[77].mxu0 }
 0x397   :  { %v3632_v16 = vpack.c.bf16 %v3572_v59, %v3568_v9  ;;  %v3496_v14 = vpop.f32.mrb[92].mxu1  ;;  %v4666_v12 = vadd.f32 %v3046_v1, %v6268_v44  ;;  %v3048_v17 = vpop.f32.mrb[78].mxu0  ;;  %3956 = vmatprep.mubr.bf16.mxu0 %v3630_v63 }
 0x398   :  { %v4697_v53 = vadd.f32 %v3496_v14, %v6272_v39  ;;  %v3498_v6 = vpop.f32.mrb[93].mxu1  ;;  %v4667_v18 = vadd.f32 %v3048_v17, %v6264_v52  ;;  %v3050_v22 = vpop.f32.mrb[79].mxu0  ;;  %3957 = vmatmul.mubr.bf16.vlgmr.msra.gmra.mrb[104].mxu0 %v3629_v62  ;;  %v3573_v21 = vmax.f32 %v4665_v13, 0.0 }
 0x399   :  { %v4698_v31 = vadd.f32 %v3498_v6, %v6276_v45  ;;  %v3500_v19 = vpop.f32.mrb[94].mxu1  ;;  %4053 = vmatprep.mubr.bf16.mxu1 %v3632_v16  ;;  %v4668_v20 = vadd.f32 %v3050_v22, %v6268_v44  ;;  %v3574_v50 = vmax.f32 %v4666_v12, 0.0 }
 0x39a   :  { %v3577_v23 = vmax.f32 %v4667_v18, 0.0  ;;  %v4699_v27 = vadd.f32 %v3500_v19, %v6272_v39  ;;  %v3502_v43 = vpop.f32.mrb[95].mxu1  ;;  %4054 = vmatmul.mubr.bf16.vlgmr.msra.gmra.mrb[120].mxu1 %v3631_v42  ;;  %v3575_v30 = vmax.f32 %v4697_v53, 0.0 }
 0x39b   :  { %v3578_v38 = vmax.f32 %v4668_v20, 0.0  ;;  %v4700_v29 = vadd.f32 %v3502_v43, %v6276_v45  ;;  %v3576_v37 = vmax.f32 %v4698_v31, 0.0 }
 0x39c   :  { %v3633_v34 = vpack.c.bf16 %v3577_v23, %v3573_v21  ;;  %v3579_v35 = vmax.f32 %v4699_v27, 0.0 }
 0x39d   :  { %v3634_v40 = vpack.c.bf16 %v3578_v38, %v3574_v50  ;;  %v3580_v36 = vmax.f32 %v4700_v29, 0.0  ;;  %v3054_v24 = vpop.f32.mrb[80].mxu0 }
 0x39e   :  { %v3635_v4 = vpack.c.bf16 %v3579_v35, %v3575_v30  ;;  %v4669_v41 = vadd.f32 %v3054_v24, %v6264_v52  ;;  %v3056_v8 = vpop.f32.mrb[81].mxu0 }
 0x39f   :  { %v3636_v11 = vpack.c.bf16 %v3580_v36, %v3576_v37  ;;  %v3506_v46 = vpop.f32.mrb[96].mxu1  ;;  %v4670_v28 = vadd.f32 %v3056_v8, %v6268_v44  ;;  %v3058_v47 = vpop.f32.mrb[82].mxu0  ;;  %3964 = vmatprep.mubr.bf16.mxu0 %v3634_v40 }
 0x3a0   :  { %v4701_v48 = vadd.f32 %v3506_v46, %v6272_v39  ;;  %v3508_v49 = vpop.f32.mrb[97].mxu1  ;;  %v4671_v0 = vadd.f32 %v3058_v47, %v6264_v52  ;;  %v3060_v57 = vpop.f32.mrb[83].mxu0  ;;  %3965 = vmatmul.mubr.bf16.gmra.mrb[108].mxu0 %v3633_v34  ;;  %v3581_v15 = vmax.f32 %v4669_v41, 0.0 }
 0x3a1   :  { %v4702_v51 = vadd.f32 %v3508_v49, %v6276_v45  ;;  %v3510_v3 = vpop.f32.mrb[98].mxu1  ;;  %4061 = vmatprep.mubr.bf16.mxu1 %v3636_v11  ;;  %v4672_v54 = vadd.f32 %v3060_v57, %v6268_v44  ;;  %v3582_v33 = vmax.f32 %v4670_v28, 0.0 }
 0x3a2   :  { %v3585_v32 = vmax.f32 %v4671_v0, 0.0  ;;  %v4703_v55 = vadd.f32 %v3510_v3, %v6272_v39  ;;  %v3512_v2 = vpop.f32.mrb[99].mxu1  ;;  %4062 = vmatmul.mubr.bf16.gmra.mrb[124].mxu1 %v3635_v4  ;;  %v3583_v26 = vmax.f32 %v4701_v48, 0.0 }
 0x3a3   :  { %v3586_v5 = vmax.f32 %v4672_v54, 0.0  ;;  %v4704_v56 = vadd.f32 %v3512_v2, %v6276_v45  ;;  %v3584_v60 = vmax.f32 %v4702_v51, 0.0 }
 0x3a4   :  { %v3637_v58 = vpack.c.bf16 %v3585_v32, %v3581_v15  ;;  %v3587_v25 = vmax.f32 %v4703_v55, 0.0 }
 0x3a5   :  { %v3638_v61 = vpack.c.bf16 %v3586_v5, %v3582_v33  ;;  %v3588_v62 = vmax.f32 %v4704_v56, 0.0  ;;  %v3064_v10 = vpop.f32.mrb[84].mxu0 }
 0x3a6   :  { %v3639_v9 = vpack.c.bf16 %v3587_v25, %v3583_v26  ;;  %v4673_v63 = vadd.f32 %v3064_v10, %v6264_v52  ;;  %v3066_v59 = vpop.f32.mrb[85].mxu0 }
 0x3a7   :  { %v3640_v7 = vpack.c.bf16 %v3588_v62, %v3584_v60  ;;  %v3516_v42 = vpop.f32.mrb[100].mxu1  ;;  %v4674_v13 = vadd.f32 %v3066_v59, %v6268_v44  ;;  %v3068_v1 = vpop.f32.mrb[86].mxu0  ;;  %3972 = vmatprep.mubr.bf16.mxu0 %v3638_v61 }
 0x3a8   :  { %v4705_v16 = vadd.f32 %v3516_v42, %v6272_v39  ;;  %v3518_v14 = vpop.f32.mrb[101].mxu1  ;;  %v4675_v12 = vadd.f32 %v3068_v1, %v6264_v52  ;;  %v3070_v17 = vpop.f32.mrb[87].mxu0  ;;  %3973 = vmatmul.mubr.bf16.gmra.mrb[112].mxu0 %v3637_v58  ;;  %v3589_v22 = vmax.f32 %v4673_v63, 0.0 }
 0x3a9   :  { %v4706_v53 = vadd.f32 %v3518_v14, %v6276_v45  ;;  %v3520_v6 = vpop.f32.mrb[102].mxu1  ;;  %4069 = vmatprep.mubr.bf16.mxu1 %v3640_v7  ;;  %v4676_v18 = vadd.f32 %v3070_v17, %v6268_v44  ;;  %v3590_v21 = vmax.f32 %v4674_v13, 0.0 }
 0x3aa   :  { %v3593_v31 = vmax.f32 %v4675_v12, 0.0  ;;  %v4707_v19 = vadd.f32 %v3520_v6, %v6272_v39  ;;  %v3522_v20 = vpop.f32.mrb[103].mxu1  ;;  %4070 = vmatmul.mubr.bf16.gmra.mrb[128].mxu1 %v3639_v9  ;;  %v3591_v43 = vmax.f32 %v4705_v16, 0.0 }
 0x3ab   :  { %v3594_v23 = vmax.f32 %v4676_v18, 0.0  ;;  %v4708_v27 = vadd.f32 %v3522_v20, %v6276_v45  ;;  %v3592_v29 = vmax.f32 %v4706_v53, 0.0 }
 0x3ac   :  { %v3641_v50 = vpack.c.bf16 %v3593_v31, %v3589_v22  ;;  %v3595_v38 = vmax.f32 %v4707_v19, 0.0 }
 0x3ad   :  { %v3642_v30 = vpack.c.bf16 %v3594_v23, %v3590_v21  ;;  %v3596_v34 = vmax.f32 %v4708_v27, 0.0  ;;  %v3074_v35 = vpop.f32.mrb[88].mxu0 }
 0x3ae   :  { %v3643_v37 = vpack.c.bf16 %v3595_v38, %v3591_v43  ;;  %v4677_v40 = vadd.f32 %v3074_v35, %v6264_v52  ;;  %v3076_v36 = vpop.f32.mrb[89].mxu0 }
 0x3af   :  { %v3644_v24 = vpack.c.bf16 %v3596_v34, %v3592_v29  ;;  %v3526_v4 = vpop.f32.mrb[104].mxu1  ;;  %v4678_v41 = vadd.f32 %v3076_v36, %v6268_v44  ;;  %v3078_v8 = vpop.f32.mrb[90].mxu0  ;;  %3980 = vmatprep.mubr.bf16.mxu0 %v3642_v30 }
 0x3b0   :  { %v4709_v11 = vadd.f32 %v3526_v4, %v6272_v39  ;;  %v3528_v46 = vpop.f32.mrb[105].mxu1  ;;  %v4679_v28 = vadd.f32 %v3078_v8, %v6264_v52  ;;  %v3080_v47 = vpop.f32.mrb[91].mxu0  ;;  %3981 = vmatmul.mubr.bf16.gmra.mrb[116].mxu0 %v3641_v50  ;;  %v3597_v57 = vmax.f32 %v4677_v40, 0.0 }
 0x3b1   :  { %v4710_v48 = vadd.f32 %v3528_v46, %v6276_v45  ;;  %v3530_v49 = vpop.f32.mrb[106].mxu1  ;;  %4077 = vmatprep.mubr.bf16.mxu1 %v3644_v24  ;;  %v4680_v0 = vadd.f32 %v3080_v47, %v6268_v44  ;;  %v3598_v15 = vmax.f32 %v4678_v41, 0.0 }
 0x3b2   :  { %v3601_v51 = vmax.f32 %v4679_v28, 0.0  ;;  %v4711_v3 = vadd.f32 %v3530_v49, %v6272_v39  ;;  %v3532_v54 = vpop.f32.mrb[107].mxu1  ;;  %4078 = vmatmul.mubr.bf16.gmra.mrb[132].mxu1 %v3643_v37  ;;  %v3599_v2 = vmax.f32 %v4709_v11, 0.0 }
 0x3b3   :  { %v3602_v32 = vmax.f32 %v4680_v0, 0.0  ;;  %v4712_v55 = vadd.f32 %v3532_v54, %v6276_v45  ;;  %v3600_v56 = vmax.f32 %v4710_v48, 0.0 }
 0x3b4   :  { %v3645_v33 = vpack.c.bf16 %v3601_v51, %v3597_v57  ;;  %v3603_v5 = vmax.f32 %v4711_v3, 0.0 }
 0x3b5   :  { %v3646_v26 = vpack.c.bf16 %v3602_v32, %v3598_v15  ;;  %v3604_v58 = vmax.f32 %v4712_v55, 0.0  ;;  %v3084_v25 = vpop.f32.mrb[92].mxu0 }
 0x3b6   :  { %v3647_v60 = vpack.c.bf16 %v3603_v5, %v3599_v2  ;;  %v4681_v61 = vadd.f32 %v3084_v25, %v6264_v52  ;;  %v3086_v62 = vpop.f32.mrb[93].mxu0 }
 0x3b7   :  { %v3648_v10 = vpack.c.bf16 %v3604_v58, %v3600_v56  ;;  %v3536_v9 = vpop.f32.mrb[108].mxu1  ;;  %v4682_v63 = vadd.f32 %v3086_v62, %v6268_v44  ;;  %v3088_v59 = vpop.f32.mrb[94].mxu0  ;;  %3988 = vmatprep.mubr.bf16.mxu0 %v3646_v26 }
 0x3b8   :  { %v4713_v7 = vadd.f32 %v3536_v9, %v6272_v39  ;;  %v3538_v42 = vpop.f32.mrb[109].mxu1  ;;  %v4683_v13 = vadd.f32 %v3088_v59, %v6264_v52  ;;  %v3090_v1 = vpop.f32.mrb[95].mxu0  ;;  %3989 = vmatmul.mubr.bf16.gmra.mrb[120].mxu0 %v3645_v33  ;;  %v3605_v17 = vmax.f32 %v4681_v61, 0.0 }
 0x3b9   :  { %v4714_v16 = vadd.f32 %v3538_v42, %v6276_v45  ;;  %v3540_v14 = vpop.f32.mrb[110].mxu1  ;;  %4085 = vmatprep.mubr.bf16.mxu1 %v3648_v10  ;;  %v4684_v12 = vadd.f32 %v3090_v1, %v6268_v44  ;;  %v3606_v22 = vmax.f32 %v4682_v63, 0.0 }
 0x3ba   :  { %v3609_v53 = vmax.f32 %v4683_v13, 0.0  ;;  %v4715_v6 = vadd.f32 %v3540_v14, %v6272_v39  ;;  %v3542_v18 = vpop.f32.mrb[111].mxu1  ;;  %4086 = vmatmul.mubr.bf16.gmra.mrb[136].mxu1 %v3647_v60  ;;  %v3607_v20 = vmax.f32 %v4713_v7, 0.0 }
 0x3bb   :  { %v3610_v31 = vmax.f32 %v4684_v12, 0.0  ;;  %v4716_v19 = vadd.f32 %v3542_v18, %v6276_v45  ;;  %v3608_v27 = vmax.f32 %v4714_v16, 0.0 }
 0x3bc   :  { %v3649_v21 = vpack.c.bf16 %v3609_v53, %v3605_v17  ;;  %v3611_v23 = vmax.f32 %v4715_v6, 0.0 }
 0x3bd   :  { %v3650_v43 = vpack.c.bf16 %v3610_v31, %v3606_v22  ;;  %v3612_v50 = vmax.f32 %v4716_v19, 0.0  ;;  %v3094_v38 = vpop.f32.mrb[96].mxu0 }
 0x3be   :  { %v3651_v29 = vpack.c.bf16 %v3611_v23, %v3607_v20  ;;  %v4685_v30 = vadd.f32 %v3094_v38, %v6264_v52  ;;  %v3096_v34 = vpop.f32.mrb[97].mxu0 }
 0x3bf   :  { %v3652_v35 = vpack.c.bf16 %v3612_v50, %v3608_v27  ;;  %v3546_v37 = vpop.f32.mrb[112].mxu1  ;;  %v4686_v40 = vadd.f32 %v3096_v34, %v6268_v44  ;;  %v3098_v36 = vpop.f32.mrb[98].mxu0  ;;  %3996 = vmatprep.mubr.bf16.mxu0 %v3650_v43 }
 0x3c0   :  { %v4717_v24 = vadd.f32 %v3546_v37, %v6272_v39  ;;  %v3548_v4 = vpop.f32.mrb[113].mxu1  ;;  %v4687_v41 = vadd.f32 %v3098_v36, %v6264_v52  ;;  %v3100_v8 = vpop.f32.mrb[99].mxu0  ;;  %3997 = vmatmul.mubr.bf16.gmra.mrb[124].mxu0 %v3649_v21  ;;  %v3613_v47 = vmax.f32 %v4685_v30, 0.0 }
 0x3c1   :  { %v4718_v11 = vadd.f32 %v3548_v4, %v6276_v45  ;;  %v3550_v46 = vpop.f32.mrb[114].mxu1  ;;  %4093 = vmatprep.mubr.bf16.mxu1 %v3652_v35  ;;  %v4688_v28 = vadd.f32 %v3100_v8, %v6268_v44  ;;  %v3614_v57 = vmax.f32 %v4686_v40, 0.0 }
 0x3c2   :  { %v3617_v48 = vmax.f32 %v4687_v41, 0.0  ;;  %v4719_v49 = vadd.f32 %v3550_v46, %v6272_v39  ;;  %v3552_v0 = vpop.f32.mrb[115].mxu1  ;;  %4094 = vmatmul.mubr.bf16.gmra.mrb[140].mxu1 %v3651_v29  ;;  %v3615_v54 = vmax.f32 %v4717_v24, 0.0 }
 0x3c3   :  { %v3618_v51 = vmax.f32 %v4688_v28, 0.0  ;;  %v4720_v3 = vadd.f32 %v3552_v0, %v6276_v45  ;;  %v3616_v55 = vmax.f32 %v4718_v11, 0.0 }
 0x3c4   :  { %v3653_v15 = vpack.c.bf16 %v3617_v48, %v3613_v47  ;;  %v3619_v32 = vmax.f32 %v4719_v49, 0.0 }
 0x3c5   :  { %v3654_v2 = vpack.c.bf16 %v3618_v51, %v3614_v57  ;;  %v3620_v33 = vmax.f32 %v4720_v3, 0.0  ;;  %v3104_v5 = vpop.f32.mrb[100].mxu0 }
 0x3c6   :  { %v3655_v56 = vpack.c.bf16 %v3619_v32, %v3615_v54  ;;  %v4689_v26 = vadd.f32 %v3104_v5, %v6264_v52  ;;  %v3106_v58 = vpop.f32.mrb[101].mxu0 }
 0x3c7   :  { %v3656_v25 = vpack.c.bf16 %v3620_v33, %v3616_v55  ;;  %v3556_v60 = vpop.f32.mrb[116].mxu1  ;;  %v4690_v61 = vadd.f32 %v3106_v58, %v6268_v44  ;;  %v3108_v62 = vpop.f32.mrb[102].mxu0  ;;  %4004 = vmatprep.mubr.bf16.mxu0 %v3654_v2 }
 0x3c8   :  { %v4721_v10 = vadd.f32 %v3556_v60, %v6272_v39  ;;  %v3558_v9 = vpop.f32.mrb[117].mxu1  ;;  %v4691_v63 = vadd.f32 %v3108_v62, %v6264_v52  ;;  %v3110_v59 = vpop.f32.mrb[103].mxu0  ;;  %4005 = vmatmul.mubr.bf16.gmra.mrb[128].mxu0 %v3653_v15  ;;  %v3621_v1 = vmax.f32 %v4689_v26, 0.0 }
 0x3c9   :  { %v4722_v7 = vadd.f32 %v3558_v9, %v6276_v45  ;;  %v3560_v42 = vpop.f32.mrb[118].mxu1  ;;  %4101 = vmatprep.mubr.bf16.mxu1 %v3656_v25  ;;  %v4692_v13 = vadd.f32 %v3110_v59, %v6268_v44  ;;  %v3622_v17 = vmax.f32 %v4690_v61, 0.0 }
 0x3ca   :  { %v3625_v16 = vmax.f32 %v4691_v63, 0.0  ;;  %v4723_v14 = vadd.f32 %v3560_v42, %v6272_v39  ;;  %v3562_v12 = vpop.f32.mrb[119].mxu1  ;;  %4102 = vmatmul.mubr.bf16.gmra.mrb[144].mxu1 %v3655_v56  ;;  %v3623_v18 = vmax.f32 %v4721_v10, 0.0  ;;  %v6345_v39 = vld [vmem:[%s6383_s8] ss:$0 sm:$0xff]  ;;  %s5405_s8 = smov [#allocation5]  }
 0x3cb   :  { %v3626_v53 = vmax.f32 %v4692_v13, 0.0  ;;  %v4724_v6 = vadd.f32 %v3562_v12, %v6276_v45  ;;  %v3624_v31 = vmax.f32 %v4722_v7, 0.0  ;;  %s4139_s2 = sshll.u32 %s5405_s8, 4  ;;  %s4140_s2 = int_to_ptr.vmem [resolvable:$true] %s4139_s2 }
 0x3cc   :  { %v3657_v52 = vpack.c.bf16 %v3625_v16, %v3621_v1  ;;  %v3627_v22 = vmax.f32 %v4723_v14, 0.0  ;;  %s5375_s5 = scalar_lea.vmem %s4140_s2, 2048  ;;  %p5380_p9 = scmp.lt.s32.totalorder %s4140_s2, %s4140_s2 }
 0x3cd   :  { %v3658_v19 = vpack.c.bf16 %v3626_v53, %v3622_v17  ;;  %v3628_v20 = vmax.f32 %v4724_v6, 0.0  ;;  %p5376_p8 = scmp.ne.s32.totalorder %s4140_s2, %s5375_s5  ;;  %p5381_p10 = scmp.lt.s32.totalorder %s5375_s5, %s5375_s5 }
 0x3ce   :  { %v3659_v21 = vpack.c.bf16 %v3627_v22, %v3623_v18 }
 0x3cf   :  { %v3660_v23 = vpack.c.bf16 %v3628_v20, %v3624_v31  ;;  %4012 = vmatprep.mubr.bf16.mxu0 %v3658_v19  ;;  %p5382_p11 = por %p5381_p10, %p5380_p9 }
 0x3d0   :  { %4013 = vmatmul.mubr.bf16.gmra.mrb[132].mxu0 %v3657_v52 }
 0x3d1   :  { %4109 = vmatprep.mubr.bf16.mxu1 %v3660_v23  ;;  %p5383_p12 = pnand %p5382_p11, %p5376_p8 }
 0x3d2   :  { %4110 = vmatmul.mubr.bf16.gmra.mrb[148].mxu1 %v3659_v21 }
 0x46b   :  { %v4541_v44 = vpop.f32.mrb[104].mxu0 }
 0x46c   :  { %v4542_v27 = vpop.f32.mrb[105].mxu0 }
 0x46d   :  { %v4605_v45 = vpop.f32.mrb[120].mxu1  ;;  %v4543_v43 = vadd.f32 %v4542_v27, %v4541_v44  ;;  %v4544_v50 = vpop.f32.mrb[106].mxu0 }
 0x46e   :  { %v4606_v38 = vpop.f32.mrb[121].mxu1  ;;  %v4545_v29 = vpop.f32.mrb[107].mxu0 }
 0x46f   :  { %v3959_v30 = vadd.f32 %v4543_v43, %v6345_v39  ;;  %v4607_v34 = vadd.f32 %v4606_v38, %v4605_v45  ;;  %v4608_v35 = vpop.f32.mrb[122].mxu1  ;;  %v4546_v37 = vadd.f32 %v4545_v29, %v4544_v50 }
 0x470   :  { %v4609_v40 = vpop.f32.mrb[123].mxu1 }
 0x471   :  { %v4056_v36 = vadd.f32 %v4607_v34, %v3959_v30  ;;  %v3962_v24 = vadd.f32 %v4546_v37, %v6345_v39  ;;  %v4610_v4 = vadd.f32 %v4609_v40, %v4608_v35 }
 0x473   :  { %4118 = vst [vmem:[#allocation5] sm:$0xff] %v4056_v36  ;;  %v4059_v41 = vadd.f32 %v4610_v4, %v3962_v24  ;;  %v4547_v8 = vpop.f32.mrb[108].mxu0 }
 0x474   :  { %v4548_v11 = vpop.f32.mrb[109].mxu0 }
 0x475   :  { %4119 = vst [vmem:[#allocation5 + $0x8] sm:$0xff] %v4059_v41  ;;  %v4611_v46 = vpop.f32.mrb[124].mxu1  ;;  %v4549_v28 = vadd.f32 %v4548_v11, %v4547_v8  ;;  %v4550_v47 = vpop.f32.mrb[110].mxu0 }
 0x476   :  { %v4612_v48 = vpop.f32.mrb[125].mxu1  ;;  %v4551_v49 = vpop.f32.mrb[111].mxu0 }
 0x477   :  { %v3967_v0 = vadd.f32 %v4549_v28, %v6345_v39  ;;  %v4613_v57 = vadd.f32 %v4612_v48, %v4611_v46  ;;  %v4614_v51 = vpop.f32.mrb[126].mxu1  ;;  %v4552_v3 = vadd.f32 %v4551_v49, %v4550_v47 }
 0x478   :  { %v4615_v54 = vpop.f32.mrb[127].mxu1 }
 0x479   :  { %v4064_v15 = vadd.f32 %v4613_v57, %v3967_v0  ;;  %v3970_v32 = vadd.f32 %v4552_v3, %v6345_v39  ;;  %v4616_v55 = vadd.f32 %v4615_v54, %v4614_v51 }
 0x47b   :  { %4120 = vst [vmem:[#allocation5 + $0x10] sm:$0xff] %v4064_v15  ;;  %v4067_v2 = vadd.f32 %v4616_v55, %v3970_v32  ;;  %v4553_v33 = vpop.f32.mrb[112].mxu0 }
 0x47c   :  { %v4554_v5 = vpop.f32.mrb[113].mxu0 }
 0x47d   :  { %4121 = vst [vmem:[#allocation5 + $0x18] sm:$0xff] %v4067_v2  ;;  %v4617_v56 = vpop.f32.mrb[128].mxu1  ;;  %v4555_v26 = vadd.f32 %v4554_v5, %v4553_v33  ;;  %v4556_v58 = vpop.f32.mrb[114].mxu0 }
 0x47e   :  { %v4618_v25 = vpop.f32.mrb[129].mxu1  ;;  %v4557_v60 = vpop.f32.mrb[115].mxu0 }
 0x47f   :  { %v3975_v61 = vadd.f32 %v4555_v26, %v6345_v39  ;;  %v4619_v62 = vadd.f32 %v4618_v25, %v4617_v56  ;;  %v4620_v10 = vpop.f32.mrb[130].mxu1  ;;  %v4558_v9 = vadd.f32 %v4557_v60, %v4556_v58 }
 0x480   :  { %v4621_v63 = vpop.f32.mrb[131].mxu1 }
 0x481   :  { %v4072_v59 = vadd.f32 %v4619_v62, %v3975_v61  ;;  %v3978_v7 = vadd.f32 %v4558_v9, %v6345_v39  ;;  %v4622_v42 = vadd.f32 %v4621_v63, %v4620_v10 }
 0x483   :  { %4122 = vst [vmem:[#allocation5 + $0x20] sm:$0xff] %v4072_v59  ;;  %v4075_v13 = vadd.f32 %v4622_v42, %v3978_v7  ;;  %v4559_v1 = vpop.f32.mrb[116].mxu0 }
 0x484   :  { %v4560_v16 = vpop.f32.mrb[117].mxu0 }
 0x485   :  { %4123 = vst [vmem:[#allocation5 + $0x28] sm:$0xff] %v4075_v13  ;;  %v4623_v14 = vpop.f32.mrb[132].mxu1  ;;  %v4561_v12 = vadd.f32 %v4560_v16, %v4559_v1  ;;  %v4562_v17 = vpop.f32.mrb[118].mxu0 }
 0x486   :  { %v4624_v53 = vpop.f32.mrb[133].mxu1  ;;  %v4563_v6 = vpop.f32.mrb[119].mxu0 }
 0x487   :  { %v3983_v18 = vadd.f32 %v4561_v12, %v6345_v39  ;;  %v4625_v52 = vadd.f32 %v4624_v53, %v4623_v14  ;;  %v4626_v22 = vpop.f32.mrb[134].mxu1  ;;  %v4564_v31 = vadd.f32 %v4563_v6, %v4562_v17 }
 0x488   :  { %v4627_v19 = vpop.f32.mrb[135].mxu1 }
 0x489   :  { %v4080_v20 = vadd.f32 %v4625_v52, %v3983_v18  ;;  %v3986_v21 = vadd.f32 %v4564_v31, %v6345_v39  ;;  %v4628_v23 = vadd.f32 %v4627_v19, %v4626_v22 }
 0x48b   :  { %4124 = vst [vmem:[#allocation5 + $0x30] sm:$0xff] %v4080_v20  ;;  %v4083_v44 = vadd.f32 %v4628_v23, %v3986_v21  ;;  %v4565_v27 = vpop.f32.mrb[120].mxu0 }
 0x48c   :  { %v4566_v45 = vpop.f32.mrb[121].mxu0 }
 0x48d   :  { %4125 = vst [vmem:[#allocation5 + $0x38] sm:$0xff] %v4083_v44  ;;  %v4629_v43 = vpop.f32.mrb[136].mxu1  ;;  %v4567_v50 = vadd.f32 %v4566_v45, %v4565_v27  ;;  %v4568_v38 = vpop.f32.mrb[122].mxu0 }
 0x48e   :  { %v4630_v29 = vpop.f32.mrb[137].mxu1  ;;  %v4569_v30 = vpop.f32.mrb[123].mxu0 }
 0x48f   :  { %v3991_v34 = vadd.f32 %v4567_v50, %v6345_v39  ;;  %v4631_v35 = vadd.f32 %v4630_v29, %v4629_v43  ;;  %v4632_v37 = vpop.f32.mrb[138].mxu1  ;;  %v4570_v40 = vadd.f32 %v4569_v30, %v4568_v38 }
 0x490   :  { %v4633_v36 = vpop.f32.mrb[139].mxu1 }
 0x491   :  { %v4088_v24 = vadd.f32 %v4631_v35, %v3991_v34  ;;  %v3994_v4 = vadd.f32 %v4570_v40, %v6345_v39  ;;  %v4634_v41 = vadd.f32 %v4633_v36, %v4632_v37 }
 0x493   :  { %4126 = vst [vmem:[#allocation5 + $0x40] sm:$0xff] %v4088_v24  ;;  %v4091_v8 = vadd.f32 %v4634_v41, %v3994_v4  ;;  %v4571_v11 = vpop.f32.mrb[124].mxu0 }
 0x494   :  { %v4572_v46 = vpop.f32.mrb[125].mxu0 }
 0x495   :  { %4127 = vst [vmem:[#allocation5 + $0x48] sm:$0xff] %v4091_v8  ;;  %v4635_v28 = vpop.f32.mrb[140].mxu1  ;;  %v4573_v47 = vadd.f32 %v4572_v46, %v4571_v11  ;;  %v4574_v48 = vpop.f32.mrb[126].mxu0 }
 0x496   :  { %v4636_v49 = vpop.f32.mrb[141].mxu1  ;;  %v4575_v0 = vpop.f32.mrb[127].mxu0 }
 0x497   :  { %v3999_v57 = vadd.f32 %v4573_v47, %v6345_v39  ;;  %v4637_v51 = vadd.f32 %v4636_v49, %v4635_v28  ;;  %v4638_v3 = vpop.f32.mrb[142].mxu1  ;;  %v4576_v54 = vadd.f32 %v4575_v0, %v4574_v48 }
 0x498   :  { %v4639_v15 = vpop.f32.mrb[143].mxu1 }
 0x499   :  { %v4096_v32 = vadd.f32 %v4637_v51, %v3999_v57  ;;  %v4002_v55 = vadd.f32 %v4576_v54, %v6345_v39  ;;  %v4640_v2 = vadd.f32 %v4639_v15, %v4638_v3 }
 0x49b   :  { %4128 = vst [vmem:[#allocation5 + $0x50] sm:$0xff] %v4096_v32  ;;  %v4099_v33 = vadd.f32 %v4640_v2, %v4002_v55  ;;  %v4577_v5 = vpop.f32.mrb[128].mxu0 }
 0x49c   :  { %v4578_v56 = vpop.f32.mrb[129].mxu0 }
 0x49d   :  { %4129 = vst [vmem:[#allocation5 + $0x58] sm:$0xff] %v4099_v33  ;;  %v4641_v26 = vpop.f32.mrb[144].mxu1  ;;  %v4579_v58 = vadd.f32 %v4578_v56, %v4577_v5  ;;  %v4580_v25 = vpop.f32.mrb[130].mxu0 }
 0x49e   :  { %v4642_v60 = vpop.f32.mrb[145].mxu1  ;;  %v4581_v61 = vpop.f32.mrb[131].mxu0 }
 0x49f   :  { %v4007_v62 = vadd.f32 %v4579_v58, %v6345_v39  ;;  %v4643_v10 = vadd.f32 %v4642_v60, %v4641_v26  ;;  %v4644_v9 = vpop.f32.mrb[146].mxu1  ;;  %v4582_v63 = vadd.f32 %v4581_v61, %v4580_v25 }
 0x4a0   :  { %v4645_v59 = vpop.f32.mrb[147].mxu1 }
 0x4a1   :  { %v4104_v7 = vadd.f32 %v4643_v10, %v4007_v62  ;;  %v4010_v42 = vadd.f32 %v4582_v63, %v6345_v39  ;;  %v4646_v13 = vadd.f32 %v4645_v59, %v4644_v9 }
 0x4a3   :  { %4130 = vst [vmem:[#allocation5 + $0x60] sm:$0xff] %v4104_v7  ;;  %v4107_v1 = vadd.f32 %v4646_v13, %v4010_v42  ;;  %v4583_v16 = vpop.f32.mrb[132].mxu0 }
 0x4a4   :  { %v4584_v14 = vpop.f32.mrb[133].mxu0 }
 0x4a5   :  { %4131 = vst [vmem:[#allocation5 + $0x68] sm:$0xff] %v4107_v1  ;;  %v4647_v12 = vpop.f32.mrb[148].mxu1  ;;  %v4585_v17 = vadd.f32 %v4584_v14, %v4583_v16  ;;  %v4586_v53 = vpop.f32.mrb[134].mxu0 }
 0x4a6   :  { %v4648_v6 = vpop.f32.mrb[149].mxu1  ;;  %v4587_v18 = vpop.f32.mrb[135].mxu0 }
 0x4a7   :  { %v4015_v52 = vadd.f32 %v4585_v17, %v6345_v39  ;;  %v4649_v22 = vadd.f32 %v4648_v6, %v4647_v12  ;;  %v4650_v31 = vpop.f32.mrb[150].mxu1  ;;  %v4588_v19 = vadd.f32 %v4587_v18, %v4586_v53 }
 0x4a8   :  { %v4651_v20 = vpop.f32.mrb[151].mxu1 }
 0x4a9   :  { %v4112_v21 = vadd.f32 %v4649_v22, %v4015_v52  ;;  %v4018_v23 = vadd.f32 %v4588_v19, %v6345_v39  ;;  %v4652_v44 = vadd.f32 %v4651_v20, %v4650_v31 }
 0x4ab   :  { %4132 = vst [vmem:[#allocation5 + $0x70] sm:$0xff] %v4112_v21  ;;  %v4115_v27 = vadd.f32 %v4652_v44, %v4018_v23 }
 0x4ad   :  { %4133 = vst [vmem:[#allocation5 + $0x78] sm:$0xff] %v4115_v27 }
 0x4ae   :  { %5386 = shalt.err (!%p5383_p12)
}
 0x4af   :  { %s5387_s29 = scalar_lea.hbm %s6384_s9, 2048 }
 0x4b0   :  { %p5388_p13 = scmp.ne.s32.totalorder %s6384_s9, %s5387_s29  ;;  %p5391_p0 = scmp.lt.u32.totalorder %s5387_s29, %s6384_s9 }
 0x4b2   :  { %p5393_p1 = pnand %p5391_p0, %p5388_p13 }
 0x4b4   :  { %5396 = shalt.err (!%p5393_p1)
}
 0x4b5   :  { %s5406_s12 = smov 128   ;;  %s5407_s13 = smov 8  }
 0x4b6   :  { %4145 = dma.vmem_to_hbm [thread:$0]  %s4140_s2, 2048, %s6384_s9, [#allocation4], %s5406_s12, %s5406_s12, %s5407_s13  }
 0x4b7   :  { %5399 = dma.done.wait [#allocation4], 2048  }
 0x4b8   :  { %5400 = vsyncadd [#allocation4], 4294965248 }
 0x4b9   :  { %4149 = vsyncpa [#allocation3], 1 }
 0x4ba   :  { %4150 = vsyncpa [#allocation4], 1 }

</bundles_post_ra>
